<compile_context>
chip_gen: v7x
topology: tpu7x:2x2x1
jax: 0.10.0
libtpu: 0.0.40
codegen_flags: <defaults>
</compile_context>

<pallas_src>
import math

import jax
import jax.numpy as jnp
from jax.experimental import pallas as pl
from jax.experimental.pallas import tpu as pltpu

NUM_CLASSES = 10
HEAD_WIDTH = 128            # lane-dense fused-head / output slab width
MAX_BATCH_TILE = 1024       # rows per grid step (multiple of 8)


def _round_up(x, m):
    return ((x + m - 1) // m) * m


def _pick_batch_tile(b):
    """Large tile (amortize per-step overhead), multiple of 8, and >= 2 grid
    steps whenever the batch allows it (so v7x's two TensorCores both work)."""
    if b <= 8:
        return b                                   # single full-extent block
    tb = min(MAX_BATCH_TILE, _round_up(b, 8))
    if pl.cdiv(b, tb) < 2:                         # would collapse to 1 step
        tb = _round_up((b + 1) // 2, 8)
    return tb


def _discriminator_kernel(x_ref, w1_ref, b1_ref, w2_ref, b2_ref, wh_ref, bh_ref,
                          out_ref):
    # bf16 cast happens here (no separate wrapper pad/cast HBM pass).
    x = x_ref[...].astype(jnp.bfloat16)                       # (TB, 784)

    # fc1 + LeakyReLU(0.2)   (bf16 operands, f32 accumulation)
    h1 = jnp.dot(x, w1_ref[...], preferred_element_type=jnp.float32) + b1_ref[...]
    h1 = jnp.maximum(h1, 0.2 * h1)

    # fc2 + LeakyReLU(0.2)
    h2 = jnp.dot(h1.astype(jnp.bfloat16), w2_ref[...],
                 preferred_element_type=jnp.float32) + b2_ref[...]
    h2 = jnp.maximum(h2, 0.2 * h2)

    # Fused heads: one lane-dense (256, 128) matmul.
    #   col 0        -> sigmoid head (Linear(256, 1))
    #   cols 1..10   -> class logits (Linear(256, 10))
    #   cols 11..127 -> zero padding
    heads = jnp.dot(h2.astype(jnp.bfloat16), wh_ref[...],
                    preferred_element_type=jnp.float32) + bh_ref[...]  # (TB,128) f32

    col = jax.lax.broadcasted_iota(jnp.int32, heads.shape, 1)
    cls_mask = (col >= 1) & (col <= NUM_CLASSES)

    # One full-width EUP exp shared by both heads.
    m = jnp.max(jnp.where(cls_mask, heads, -jnp.inf), axis=-1, keepdims=True)
    e = jnp.exp(jnp.where(col == 0, -heads, heads - m))

    # head 0: exact sigmoid (approx reciprocal can round to exactly 1.0)
    sig = 1.0 / (1.0 + e)

    # head 1: log_softmax over the 10 real class columns
    sumexp = jnp.sum(jnp.where(cls_mask, e, 0.0), axis=-1, keepdims=True)
    log_probs = heads - (m + jnp.log(sumexp))

    out_ref[...] = jnp.where(col == 0, sig,
                             jnp.where(cls_mask, log_probs, 0.0)
                             ).astype(out_ref.dtype)


def discriminator_forward(img, packed_params):
    """img: (B, C, H, W) float32.  Returns (validity (B,1), log_probs (B,10))."""
    w1, b1, w2, b2, wh, bh = packed_params

    b = img.shape[0]
    x = img.reshape(b, -1).astype(jnp.float32)     # == img.view(B, -1); no pad/cast pass
    d = x.shape[1]
    assert d == w1.shape[0]

    tb = _pick_batch_tile(b)
    grid = (pl.cdiv(b, tb),)                       # partial last block is masked

    out = pl.pallas_call(
        _discriminator_kernel,
        out_shape=jax.ShapeDtypeStruct((b, HEAD_WIDTH), jnp.float32),
        grid=grid,
        in_specs=[
            pl.BlockSpec((tb, d), lambda i: (i, 0)),     # x tile (pipelined)
            pl.BlockSpec(w1.shape, lambda i: (0, 0)),    # weights VMEM-resident
            pl.BlockSpec(b1.shape, lambda i: (0, 0)),
            pl.BlockSpec(w2.shape, lambda i: (0, 0)),
            pl.BlockSpec(b2.shape, lambda i: (0, 0)),
            pl.BlockSpec(wh.shape, lambda i: (0, 0)),
            pl.BlockSpec(bh.shape, lambda i: (0, 0)),
        ],
        out_specs=pl.BlockSpec((tb, HEAD_WIDTH), lambda i: (i, 0)),
        compiler_params=pltpu.CompilerParams(
            dimension_semantics=("parallel",),
            vmem_limit_bytes=40 * 1024 * 1024),
    )(x, w1, b1, w2, b2, wh, bh)

    # TODO(synk): for best v6e HBM behavior, fuse these slices into the consumer
    # (loss) instead of materializing two small slices from the (B, 128) slab.
    validity = out[:, 0:1]
    log_probs = out[:, 1:1 + NUM_CLASSES]
    return validity, log_probs


def init_params(key, in_dim):
    """Deterministic init mimicking torch.nn.Linear (uniform +/- 1/sqrt(fan_in)).

    Weights stored transposed vs PyTorch: (in_features, out_features).
    Biases kept 2D (1, out_features).
    """
    dims = [(in_dim, 512), (512, 256), (256, 1), (256, NUM_CLASSES)]
    keys = jax.random.split(key, 2 * len(dims))
    params = []
    for i, (fan_in, fan_out) in enumerate(dims):
        bound = 1.0 / math.sqrt(fan_in)
        w = jax.random.uniform(keys[2 * i], (fan_in, fan_out),
                               minval=-bound, maxval=bound, dtype=jnp.float32)
        bb = jax.random.uniform(keys[2 * i + 1], (1, fan_out),
                                minval=-bound, maxval=bound, dtype=jnp.float32)
        params.extend([w, bb])
    return tuple(params)


def pack_params(params):
    """Fuse / cast raw params for the kernel:
      - the two head weights/biases fused into one lane-dense (256, 128) block
      - matmul weights cast to bf16; biases kept f32 (added in f32 in-kernel)
      - w1 left unpadded at (784, 512) (feature dim is a full-extent block).
    """
    w1, b1, w2, b2, w3, b3, w4, b4 = params

    wh = jnp.zeros((w2.shape[1], HEAD_WIDTH), jnp.float32)
    wh = wh.at[:, 0:1].set(w3).at[:, 1:1 + NUM_CLASSES].set(w4)
    bh = jnp.zeros((1, HEAD_WIDTH), jnp.float32)
    bh = bh.at[:, 0:1].set(b3).at[:, 1:1 + NUM_CLASSES].set(b4)

    return (w1.astype(jnp.bfloat16), b1,
            w2.astype(jnp.bfloat16), b2,
            wh.astype(jnp.bfloat16), bh)


if __name__ == "__main__":
    # Real fashion-MNIST image shape: (1, 28, 28) -> flattened dim 784.
    B, C, H, W = 2, 1, 28, 28
    key = jax.random.PRNGKey(0)
    k_img, k_par = jax.random.split(key)

    img = jax.random.normal(k_img, (B, C, H, W), dtype=jnp.float32)
    params = init_params(k_par, C * H * W)
    packed = pack_params(params)

    validity, log_probs = discriminator_forward(img, packed)
    jax.block_until_ready((validity, log_probs))

    assert validity.shape == (B, 1)
    assert log_probs.shape == (B, NUM_CLASSES)
    # log_softmax rows exponentiate to ~1
    assert bool(jnp.all(jnp.abs(jnp.sum(jnp.exp(log_probs), axis=1) - 1.0) < 1e-4))
    # sigmoid output in (0, 1)
    assert bool(jnp.all((validity > 0.0) & (validity < 1.0)))

    # Pure-JAX f32 reference (original un-fused params); bf16 matmul operands
    # in the kernel give ~1e-2-level deviations, so use a generous tolerance.
    w1, b1, w2, b2, w3, b3, w4, b4 = params
    xf = img.reshape(B, -1)
    h = xf @ w1 + b1
    h = jnp.where(h > 0, h, 0.2 * h)
    h = h @ w2 + b2
    h = jnp.where(h > 0, h, 0.2 * h)
    val_ref = jax.nn.sigmoid(h @ w3 + b3)
    logp_ref = jax.nn.log_softmax(h @ w4 + b4, axis=1)
    assert bool(jnp.allclose(validity, val_ref, atol=5e-2, rtol=5e-2))
    assert bool(jnp.allclose(log_probs, logp_ref, atol=5e-2, rtol=5e-2))

    print("KERNEL_OK")
</pallas_src>

<mosaic_0001>
module attributes {stable_mosaic.version = 11 : i64} {
  func.func @_discriminator_kernel(%arg0: i32, %arg1: memref<2x784xf32, #tpu.memory_space<vmem>>, %arg2: memref<784x512xbf16, #tpu.memory_space<vmem>>, %arg3: memref<1x512xf32, #tpu.memory_space<vmem>>, %arg4: memref<512x256xbf16, #tpu.memory_space<vmem>>, %arg5: memref<1x256xf32, #tpu.memory_space<vmem>>, %arg6: memref<256x128xbf16, #tpu.memory_space<vmem>>, %arg7: memref<1x128xf32, #tpu.memory_space<vmem>>, %arg8: memref<2x128xf32, #tpu.memory_space<vmem>>) attributes {dimension_semantics = [#tpu.dimension_semantics<parallel>], iteration_bounds = array<i64: 1>, scalar_prefetch = 0 : i64, scratch_operands = 0 : i64, tpu.core_type = #tpu.core_type<tc>, window_params = [{transform_indices = @transform_0, window_bounds = array<i64: 2, 784>}, {pipeline_mode = #tpu.pipeline_mode<synchronous>, transform_indices = @transform_1, window_bounds = array<i64: 784, 512>}, {pipeline_mode = #tpu.pipeline_mode<synchronous>, transform_indices = @transform_2, window_bounds = array<i64: 1, 512>}, {pipeline_mode = #tpu.pipeline_mode<synchronous>, transform_indices = @transform_3, window_bounds = array<i64: 512, 256>}, {pipeline_mode = #tpu.pipeline_mode<synchronous>, transform_indices = @transform_4, window_bounds = array<i64: 1, 256>}, {pipeline_mode = #tpu.pipeline_mode<synchronous>, transform_indices = @transform_5, window_bounds = array<i64: 256, 128>}, {pipeline_mode = #tpu.pipeline_mode<synchronous>, transform_indices = @transform_6, window_bounds = array<i64: 1, 128>}, {transform_indices = @transform_7, window_bounds = array<i64: 2, 128>}]} {
    %c0 = arith.constant 0 : index
    %c0_0 = arith.constant 0 : index
    %0 = vector.load %arg1[%c0, %c0_0] : memref<2x784xf32, #tpu.memory_space<vmem>>, vector<2x784xf32>
    %1 = arith.truncf %0 : vector<2x784xf32> to vector<2x784xbf16>
    %c0_1 = arith.constant 0 : index
    %c0_2 = arith.constant 0 : index
    %2 = vector.load %arg2[%c0_1, %c0_2] : memref<784x512xbf16, #tpu.memory_space<vmem>>, vector<784x512xbf16>
    %cst = arith.constant dense<0.000000e+00> : vector<2x512xf32>
    %3 = tpu.matmul %1, %2, %cst {dimension_numbers = #tpu.dot_dimension_numbers<[1], [0], [0], [1], [0, 0, 1, 1], [], []>} : vector<2x784xbf16>, vector<784x512xbf16>, vector<2x512xf32> -> vector<2x512xf32>
    %c0_3 = arith.constant 0 : index
    %c0_4 = arith.constant 0 : index
    %4 = vector.load %arg3[%c0_3, %c0_4] : memref<1x512xf32, #tpu.memory_space<vmem>>, vector<1x512xf32>
    %5 = vector.broadcast %4 : vector<1x512xf32> to vector<2x512xf32>
    %6 = arith.addf %3, %5 : vector<2x512xf32>
    %cst_5 = arith.constant 2.000000e-01 : f32
    %7 = vector.broadcast %cst_5 : f32 to vector<2x512xf32>
    %8 = arith.mulf %7, %6 : vector<2x512xf32>
    %9 = arith.maximumf %6, %8 : vector<2x512xf32>
    %10 = arith.truncf %9 : vector<2x512xf32> to vector<2x512xbf16>
    %c0_6 = arith.constant 0 : index
    %c0_7 = arith.constant 0 : index
    %11 = vector.load %arg4[%c0_6, %c0_7] : memref<512x256xbf16, #tpu.memory_space<vmem>>, vector<512x256xbf16>
    %cst_8 = arith.constant dense<0.000000e+00> : vector<2x256xf32>
    %12 = tpu.matmul %10, %11, %cst_8 {dimension_numbers = #tpu.dot_dimension_numbers<[1], [0], [0], [1], [0, 0, 1, 1], [], []>} : vector<2x512xbf16>, vector<512x256xbf16>, vector<2x256xf32> -> vector<2x256xf32>
    %c0_9 = arith.constant 0 : index
    %c0_10 = arith.constant 0 : index
    %13 = vector.load %arg5[%c0_9, %c0_10] : memref<1x256xf32, #tpu.memory_space<vmem>>, vector<1x256xf32>
    %14 = vector.broadcast %13 : vector<1x256xf32> to vector<2x256xf32>
    %15 = arith.addf %12, %14 : vector<2x256xf32>
    %cst_11 = arith.constant 2.000000e-01 : f32
    %16 = vector.broadcast %cst_11 : f32 to vector<2x256xf32>
    %17 = arith.mulf %16, %15 : vector<2x256xf32>
    %18 = arith.maximumf %15, %17 : vector<2x256xf32>
    %19 = arith.truncf %18 : vector<2x256xf32> to vector<2x256xbf16>
    %c0_12 = arith.constant 0 : index
    %c0_13 = arith.constant 0 : index
    %20 = vector.load %arg6[%c0_12, %c0_13] : memref<256x128xbf16, #tpu.memory_space<vmem>>, vector<256x128xbf16>
    %cst_14 = arith.constant dense<0.000000e+00> : vector<2x128xf32>
    %21 = tpu.matmul %19, %20, %cst_14 {dimension_numbers = #tpu.dot_dimension_numbers<[1], [0], [0], [1], [0, 0, 1, 1], [], []>} : vector<2x256xbf16>, vector<256x128xbf16>, vector<2x128xf32> -> vector<2x128xf32>
    %c0_15 = arith.constant 0 : index
    %c0_16 = arith.constant 0 : index
    %22 = vector.load %arg7[%c0_15, %c0_16] : memref<1x128xf32, #tpu.memory_space<vmem>>, vector<1x128xf32>
    %23 = vector.broadcast %22 : vector<1x128xf32> to vector<2x128xf32>
    %24 = arith.addf %21, %23 : vector<2x128xf32>
    %25 = tpu.iota {dimensions = array<i32: 1>} : vector<2x128xi32>
    %c1_i32 = arith.constant 1 : i32
    %26 = vector.broadcast %c1_i32 : i32 to vector<2x128xi32>
    %27 = arith.cmpi sge, %25, %26 : vector<2x128xi32>
    %c10_i32 = arith.constant 10 : i32
    %28 = vector.broadcast %c10_i32 : i32 to vector<2x128xi32>
    %29 = arith.cmpi sle, %25, %28 : vector<2x128xi32>
    %30 = arith.andi %27, %29 : vector<2x128xi1>
    %cst_17 = arith.constant 0xFF800000 : f32
    %31 = vector.broadcast %cst_17 : f32 to vector<2x128xf32>
    %32 = arith.select %30, %24, %31 : vector<2x128xi1>, vector<2x128xf32>
    %cst_18 = arith.constant dense<0xFF800000> : vector<2xf32>
    %33 = vector.multi_reduction <maximumf>, %32, %cst_18 [1] : vector<2x128xf32> to vector<2xf32>
    %34 = vector.shape_cast %33 : vector<2xf32> to vector<2x1xf32>
    %c0_i32 = arith.constant 0 : i32
    %35 = vector.broadcast %c0_i32 : i32 to vector<2x128xi32>
    %36 = arith.cmpi eq, %25, %35 : vector<2x128xi32>
    %cst_19 = arith.constant 0.000000e+00 : f32
    %37 = vector.broadcast %cst_19 : f32 to vector<2x128xf32>
    %38 = arith.subf %37, %24 : vector<2x128xf32>
    %39 = vector.broadcast %34 : vector<2x1xf32> to vector<2x128xf32>
    %40 = arith.subf %24, %39 : vector<2x128xf32>
    %41 = arith.select %36, %38, %40 : vector<2x128xi1>, vector<2x128xf32>
    %42 = math.exp %41 : vector<2x128xf32>
    %cst_20 = arith.constant 1.000000e+00 : f32
    %43 = vector.broadcast %cst_20 : f32 to vector<2x128xf32>
    %44 = arith.addf %43, %42 : vector<2x128xf32>
    %cst_21 = arith.constant 1.000000e+00 : f32
    %45 = vector.broadcast %cst_21 : f32 to vector<2x128xf32>
    %46 = arith.divf %45, %44 : vector<2x128xf32>
    %cst_22 = arith.constant 0.000000e+00 : f32
    %47 = vector.broadcast %cst_22 : f32 to vector<2x128xf32>
    %48 = arith.select %30, %42, %47 : vector<2x128xi1>, vector<2x128xf32>
    %cst_23 = arith.constant dense<0.000000e+00> : vector<2xf32>
    %49 = vector.multi_reduction <add>, %48, %cst_23 [1] : vector<2x128xf32> to vector<2xf32>
    %50 = vector.shape_cast %49 : vector<2xf32> to vector<2x1xf32>
    %51 = math.log %50 : vector<2x1xf32>
    %52 = arith.addf %34, %51 : vector<2x1xf32>
    %53 = vector.broadcast %52 : vector<2x1xf32> to vector<2x128xf32>
    %54 = arith.subf %24, %53 : vector<2x128xf32>
    %c0_i32_24 = arith.constant 0 : i32
    %55 = vector.broadcast %c0_i32_24 : i32 to vector<2x128xi32>
    %56 = arith.cmpi eq, %25, %55 : vector<2x128xi32>
    %cst_25 = arith.constant 0.000000e+00 : f32
    %57 = vector.broadcast %cst_25 : f32 to vector<2x128xf32>
    %58 = arith.select %30, %54, %57 : vector<2x128xi1>, vector<2x128xf32>
    %59 = arith.select %56, %46, %58 : vector<2x128xi1>, vector<2x128xf32>
    %c0_26 = arith.constant 0 : index
    %c0_27 = arith.constant 0 : index
    %60 = vector.load %arg8[%c0_26, %c0_27] : memref<2x128xf32, #tpu.memory_space<vmem>>, vector<2x128xf32>
    tpu.vector_store %arg8[%c0_26, %c0_27], %59 {strides = array<i32>} : memref<2x128xf32, #tpu.memory_space<vmem>>, vector<2x128xf32>,
    return
  }
  func.func @transform_0(%arg0: i32) -> (i32, i32) {
    %c0_i32 = arith.constant 0 : i32
    %c0_i32_0 = arith.constant 0 : i32
    return %arg0, %c0_i32 : i32, i32
  }
  func.func @transform_1(%arg0: i32) -> (i32, i32) {
    %c0_i32 = arith.constant 0 : i32
    %c0_i32_0 = arith.constant 0 : i32
    %c0_i32_1 = arith.constant 0 : i32
    return %c0_i32, %c0_i32_0 : i32, i32
  }
  func.func @transform_2(%arg0: i32) -> (i32, i32) {
    %c0_i32 = arith.constant 0 : i32
    %c0_i32_0 = arith.constant 0 : i32
    %c0_i32_1 = arith.constant 0 : i32
    return %c0_i32, %c0_i32_0 : i32, i32
  }
  func.func @transform_3(%arg0: i32) -> (i32, i32) {
    %c0_i32 = arith.constant 0 : i32
    %c0_i32_0 = arith.constant 0 : i32
    %c0_i32_1 = arith.constant 0 : i32
    return %c0_i32, %c0_i32_0 : i32, i32
  }
  func.func @transform_4(%arg0: i32) -> (i32, i32) {
    %c0_i32 = arith.constant 0 : i32
    %c0_i32_0 = arith.constant 0 : i32
    %c0_i32_1 = arith.constant 0 : i32
    return %c0_i32, %c0_i32_0 : i32, i32
  }
  func.func @transform_5(%arg0: i32) -> (i32, i32) {
    %c0_i32 = arith.constant 0 : i32
    %c0_i32_0 = arith.constant 0 : i32
    %c0_i32_1 = arith.constant 0 : i32
    return %c0_i32, %c0_i32_0 : i32, i32
  }
  func.func @transform_6(%arg0: i32) -> (i32, i32) {
    %c0_i32 = arith.constant 0 : i32
    %c0_i32_0 = arith.constant 0 : i32
    %c0_i32_1 = arith.constant 0 : i32
    return %c0_i32, %c0_i32_0 : i32, i32
  }
  func.func @transform_7(%arg0: i32) -> (i32, i32) {
    %c0_i32 = arith.constant 0 : i32
    %c0_i32_0 = arith.constant 0 : i32
    return %arg0, %c0_i32 : i32, i32
  }
}

</mosaic_0001>

<bundles_post_ra>
// kernel: tpu_custom_call.1
= control target key start
LH: loop header
LB: loop body
LE: loop exit
PB: predicated region body
PF: predicated region fallthrough
CT: control target
= control target key end

     0   :  { %12 = vsyncpa [#allocation3], 0  ;;  %s3456_s0 = inlined_call_operand.hbm [shape: f32[2,784], index: 0, kind: input, shape index: {}]   ;;  %s3457_s1 = inlined_call_operand.hbm [shape: bf16[784,512], index: 1, kind: input, shape index: {}]   ;;  %s3458_s2 = inlined_call_operand.vmem [shape: f32[1,512], index: 2, kind: input, shape index: {}]   ;;  %s3459_s3 = inlined_call_operand.hbm [shape: bf16[512,256], index: 3, kind: input, shape index: {}]   ;;  %s3460_s4 = inlined_call_operand.vmem [shape: f32[1,256], index: 4, kind: input, shape index: {}]   ;;  %s3461_s5 = inlined_call_operand.hbm [shape: bf16[256,128], index: 5, kind: input, shape index: {}]   ;;  %s3462_s6 = inlined_call_operand.vmem [shape: f32[1,128], index: 6, kind: input, shape index: {}]   ;;  %s3463_s7 = inlined_call_operand.hbm [shape: f32[2,128], index: 7, kind: output, shape index: {}]  }
   0x1   :  { %13 = vsyncpa [#allocation6], 0 }
   0x2   :  { %14 = vsyncpa [#allocation9], 0 }
   0x3   :  { %15 = vsyncpa [#allocation4], 0  ;;  %s3256_s24 = smov [#allocation5]   ;;  %s3138_s28 = scalar_lea.hbm %s3457_s1, 25088 }
   0x4   :  { %s31_s25 = sshll.u32 %s3256_s24, 4  ;;  %p3139_p0 = scmp.ne.s32.totalorder %s3457_s1, %s3138_s28  ;;  %s32_s25 = int_to_ptr.vmem [resolvable:$true] %s31_s25 }
   0x5   :  { %p3142_p1 = scmp.lt.u32.totalorder %s3138_s28, %s3457_s1 }
   0x7   :  { %p3144_p2 = pnand %p3142_p1, %p3139_p0 }
   0x9   :  { %3147 = shalt.err (!%p3144_p2)
}
   0xa   :  { %s3148_s10 = scalar_lea.vmem %s32_s25, 25088  ;;  %p3153_p4 = scmp.lt.s32.totalorder %s32_s25, %s32_s25 }
   0xb   :  { %p3149_p3 = scmp.ne.s32.totalorder %s32_s25, %s3148_s10  ;;  %p3154_p5 = scmp.lt.s32.totalorder %s3148_s10, %s3148_s10 }
   0xd   :  { %p3155_p6 = por %p3154_p5, %p3153_p4 }
   0xf   :  { %p3156_p7 = pnand %p3155_p6, %p3149_p3 }
  0x11   :  { %3159 = shalt.err (!%p3156_p7)
}
  0x12   :  { %s3257_s11 = smov 256   ;;  %s3258_s12 = smov 16  }
  0x13   :  { %37 = dma.hbm_to_vmem [thread:$0]  %s3457_s1, 25088, %s32_s25, [#allocation6], %s3257_s11, %s3257_s11, %s3258_s12  }
  0x14   :  { %s3259_s15 = smov [#allocation2]   ;;  %s3260_s17 = smov [#allocation7]  }
  0x15   :  { %s22_s16 = sshll.u32 %s3259_s15, 4  ;;  %s45_s18 = sshll.u32 %s3260_s17, 4  ;;  %s23_s16 = int_to_ptr.vmem [resolvable:$true] %s22_s16  ;;  %s46_s18 = int_to_ptr.vmem [resolvable:$true] %s45_s18 }
  0x16   :  { %s3160_s21 = scalar_lea.hbm %s3456_s0, 224 }
  0x17   :  { %p3161_p8 = scmp.ne.s32.totalorder %s3456_s0, %s3160_s21  ;;  %p3164_p9 = scmp.lt.u32.totalorder %s3160_s21, %s3456_s0 }
  0x19   :  { %p3166_p10 = pnand %p3164_p9, %p3161_p8 }
  0x1b   :  { %3169 = shalt.err (!%p3166_p10)
}
  0x1c   :  { %s3170_s1 = scalar_lea.vmem %s23_s16, 224  ;;  %p3175_p12 = scmp.lt.s32.totalorder %s23_s16, %s23_s16 }
  0x1d   :  { %p3171_p11 = scmp.ne.s32.totalorder %s23_s16, %s3170_s1  ;;  %p3176_p13 = scmp.lt.s32.totalorder %s3170_s1, %s3170_s1 }
  0x1f   :  { %p3177_p0 = por %p3176_p13, %p3175_p12 }
  0x21   :  { %p3178_p1 = pnand %p3177_p0, %p3171_p11 }
  0x23   :  { %3181 = shalt.err (!%p3178_p1)
}
  0x24   :  { %25 = dma.hbm_to_vmem [thread:$0]  %s3456_s0, 224, %s23_s16, [#allocation3]  }
  0x25   :  { %s3182_s30 = scalar_lea.hbm %s3459_s3, 8192 }
  0x26   :  { %p3183_p2 = scmp.ne.s32.totalorder %s3459_s3, %s3182_s30  ;;  %p3186_p3 = scmp.lt.u32.totalorder %s3182_s30, %s3459_s3 }
  0x28   :  { %p3188_p4 = pnand %p3186_p3, %p3183_p2 }
  0x2a   :  { %3191 = shalt.err (!%p3188_p4)
}
  0x2b   :  { %s3192_s12 = scalar_lea.vmem %s46_s18, 8192  ;;  %p3197_p6 = scmp.lt.s32.totalorder %s46_s18, %s46_s18 }
  0x2c   :  { %p3193_p5 = scmp.ne.s32.totalorder %s46_s18, %s3192_s12  ;;  %p3198_p7 = scmp.lt.s32.totalorder %s3192_s12, %s3192_s12 }
  0x2e   :  { %p3199_p8 = por %p3198_p7, %p3197_p6 }
  0x30   :  { %p3200_p9 = pnand %p3199_p8, %p3193_p5 }
  0x32   :  { %3203 = shalt.err (!%p3200_p9)
}
  0x33   :  { %s3261_s0 = smov 128   ;;  %s3262_s13 = smov 8  }
  0x34   :  { %51 = dma.hbm_to_vmem [thread:$0]  %s3459_s3, 8192, %s46_s18, [#allocation6], %s3261_s0, %s3261_s0, %s3262_s13  }
  0x35   :  { %s3263_s16 = smov [#allocation8]   ;;  %s3204_s21 = scalar_lea.hbm %s3461_s5, 2048 }
  0x36   :  { %s59_s17 = sshll.u32 %s3263_s16, 4  ;;  %p3205_p10 = scmp.ne.s32.totalorder %s3461_s5, %s3204_s21  ;;  %s60_s17 = int_to_ptr.vmem [resolvable:$true] %s59_s17 }
  0x37   :  { %p3208_p11 = scmp.lt.u32.totalorder %s3204_s21, %s3461_s5 }
  0x39   :  { %p3210_p12 = pnand %p3208_p11, %p3205_p10 }
  0x3b   :  { %3213 = shalt.err (!%p3210_p12)
}
  0x3c   :  { %s3214_s1 = scalar_lea.vmem %s60_s17, 2048  ;;  %p3219_p0 = scmp.lt.s32.totalorder %s60_s17, %s60_s17 }
  0x3d   :  { %p3215_p13 = scmp.ne.s32.totalorder %s60_s17, %s3214_s1  ;;  %p3220_p1 = scmp.lt.s32.totalorder %s3214_s1, %s3214_s1 }
  0x3f   :  { %p3221_p2 = por %p3220_p1, %p3219_p0 }
  0x41   :  { %p3222_p3 = pnand %p3221_p2, %p3215_p13 }
  0x43   :  { %3225 = shalt.err (!%p3222_p3)
}
  0x44   :  { %s3264_s3 = smov 64   ;;  %s3265_s18 = smov 4  }
  0x45   :  { %65 = dma.hbm_to_vmem [thread:$0]  %s3461_s5, 2048, %s60_s17, [#allocation9], %s3264_s3, %s3264_s3, %s3265_s18  }
  0x46   :  { %3248 = dma.done.wait [#allocation3], 224  }
  0x47   :  { %3249 = vsyncadd [#allocation3], 4294967072 }
  0x48   :  { %3250 = dma.done.wait [#allocation6], 33280  }
  0x49   :  { %3251 = vsyncadd [#allocation6], 4294934016 }
  0x4a   :  { %3252 = dma.done.wait [#allocation9], 2048  }
  0x4b   :  { %3253 = vsyncadd [#allocation9], 4294965248  ;;  %v2724_v0 = vld [vmem:[#allocation5 + $0x4] ss:$16 sps:$4 sm:$0xff]   ;;  %v2728_v2 = vld [vmem:[#allocation5] ss:$16 sps:$4 sm:$0xff]   ;;  %v89_v38 = vlaneseq }
  0x4c   :  { %v2726_v1 = vld [vmem:[#allocation5 + $0x204] ss:$16 sps:$4 sm:$0xff]   ;;  %1334 = vmatprep.subr.bf16.mxu1 %v2724_v0  ;;  %v2729_v3 = vld [vmem:[#allocation5 + $0x200] ss:$16 sps:$4 sm:$0xff]   ;;  %v3266_v36 = vmov 1983009808  }
  0x4d   :  { %1375 = vmatprep.subr.bf16.mxu0 %v2726_v1  ;;  %v2730_v4 = vld [vmem:[#allocation5 + $0x24] ss:$16 sps:$4 sm:$0xff]   ;;  %1335 = vmatpush1.bf16.msra.mxu1 %v2728_v2  ;;  %v2734_v6 = vld [vmem:[#allocation5 + $0x20] ss:$16 sps:$4 sm:$0xff]   ;;  %v87_v37 = vunpack.c.l.s4 %v3266_v36  ;;  %v3358_v43 = vshrl.u32 %v89_v38, 7  ;;  %vm1330_vm0 = vcmask 130048  }
  0x4e   :  { %1376 = vmatpush1.bf16.msra.mxu0 %v2729_v3  ;;  %v2732_v5 = vld [vmem:[#allocation5 + $0x224] ss:$16 sps:$4 sm:$0xff]   ;;  %1336 = vmatprep.subr.bf16.mxu1 %v2730_v4  ;;  %v2735_v7 = vld [vmem:[#allocation5 + $0x220] ss:$16 sps:$4 sm:$0xff]   ;;  %vm2339_vm4 = vcmask 1041408  }
  0x4f   :  { %1377 = vmatprep.subr.bf16.mxu0 %v2732_v5  ;;  %v2736_v8 = vld [vmem:[#allocation5 + $0x44] ss:$16 sps:$4 sm:$0xff]   ;;  %v2740_v10 = vld [vmem:[#allocation5 + $0x40] ss:$16 sps:$4 sm:$0xff]   ;;  %v88_v42 = vunpack.c.0.s8 %v87_v37  ;;  %v2856_v37 = vld [vmem:[#allocation5 + $0xac] ss:$16 sps:$4 sm:$0xff]  }
  0x50   :  { %v2738_v9 = vld [vmem:[#allocation5 + $0x244] ss:$16 sps:$4 sm:$0xff]   ;;  %v2741_v11 = vld [vmem:[#allocation5 + $0x240] ss:$16 sps:$4 sm:$0xff]  }
  0x51   :  { %1337 = vmatpush1.bf16.msra.mxu1 %v2734_v6  ;;  %v2742_v12 = vld [vmem:[#allocation5 + $0x64] ss:$16 sps:$4 sm:$0xff]   ;;  %v2746_v14 = vld [vmem:[#allocation5 + $0x60] ss:$16 sps:$4 sm:$0xff]   ;;  %v3361_v49 = vsub.s32 %v88_v42, %v3358_v43  ;;  %v2862_v42 = vld [vmem:[#allocation5 + $0xcc] ss:$16 sps:$4 sm:$0xff]  }
  0x52   :  { %1378 = vmatpush1.bf16.msra.mxu0 %v2735_v7  ;;  %1338 = vmatprep.subr.bf16.mxu1 %v2736_v8  ;;  %v2744_v13 = vld [vmem:[#allocation5 + $0x264] ss:$16 sps:$4 sm:$0xff]   ;;  %v2747_v15 = vld [vmem:[#allocation5 + $0x260] ss:$16 sps:$4 sm:$0xff]  }
  0x53   :  { %1379 = vmatprep.subr.bf16.mxu0 %v2738_v9  ;;  %v2748_v16 = vld [vmem:[#allocation5 + $0x84] ss:$16 sps:$4 sm:$0xff]   ;;  %v2752_v18 = vld [vmem:[#allocation5 + $0x80] ss:$16 sps:$4 sm:$0xff]  }
  0x54   :  { %v2750_v17 = vld [vmem:[#allocation5 + $0x284] ss:$16 sps:$4 sm:$0xff]   ;;  %v2753_v19 = vld [vmem:[#allocation5 + $0x280] ss:$16 sps:$4 sm:$0xff]  }
  0x55   :  { %1339 = vmatpush1.bf16.msra.mxu1 %v2740_v10  ;;  %v2754_v20 = vld [vmem:[#allocation5 + $0xa4] ss:$16 sps:$4 sm:$0xff]   ;;  %v2758_v22 = vld [vmem:[#allocation5 + $0xa0] ss:$16 sps:$4 sm:$0xff]  }
  0x56   :  { %1380 = vmatpush1.bf16.msra.mxu0 %v2741_v11  ;;  %1340 = vmatprep.subr.bf16.mxu1 %v2742_v12  ;;  %v2756_v21 = vld [vmem:[#allocation5 + $0x2a4] ss:$16 sps:$4 sm:$0xff]   ;;  %v2759_v23 = vld [vmem:[#allocation5 + $0x2a0] ss:$16 sps:$4 sm:$0xff]  }
  0x57   :  { %1381 = vmatprep.subr.bf16.mxu0 %v2744_v13  ;;  %v2760_v24 = vld [vmem:[#allocation5 + $0xc4] ss:$16 sps:$4 sm:$0xff]   ;;  %v2764_v26 = vld [vmem:[#allocation5 + $0xc0] ss:$16 sps:$4 sm:$0xff]  }
  0x58   :  { %v2762_v25 = vld [vmem:[#allocation5 + $0x2c4] ss:$16 sps:$4 sm:$0xff]   ;;  %v2765_v27 = vld [vmem:[#allocation5 + $0x2c0] ss:$16 sps:$4 sm:$0xff]  }
  0x59   :  { %1341 = vmatpush1.bf16.msra.mxu1 %v2746_v14  ;;  %v2766_v28 = vld [vmem:[#allocation5 + $0xe4] ss:$16 sps:$4 sm:$0xff]   ;;  %v2770_v30 = vld [vmem:[#allocation5 + $0xe0] ss:$16 sps:$4 sm:$0xff]  }
  0x5a   :  { %1382 = vmatpush1.bf16.msra.mxu0 %v2747_v15  ;;  %1342 = vmatprep.subr.bf16.mxu1 %v2748_v16  ;;  %v2768_v29 = vld [vmem:[#allocation5 + $0x2e4] ss:$16 sps:$4 sm:$0xff]   ;;  %v2771_v31 = vld [vmem:[#allocation5 + $0x2e0] ss:$16 sps:$4 sm:$0xff]   ;;  %v2826_v15 = vld [vmem:[#allocation5 + $0xc] ss:$16 sps:$4 sm:$0xff]  }
  0x5b   :  { %1383 = vmatprep.subr.bf16.mxu0 %v2750_v17  ;;  %v2772_v32 = vld [vmem:[#allocation5 + $0x104] ss:$16 sps:$4 sm:$0xff]   ;;  %v2776_v34 = vld [vmem:[#allocation5 + $0x100] ss:$16 sps:$4 sm:$0xff]  }
  0x5c   :  { %v2774_v33 = vld [vmem:[#allocation5 + $0x304] ss:$16 sps:$4 sm:$0xff]   ;;  %v2777_v35 = vld [vmem:[#allocation5 + $0x300] ss:$16 sps:$4 sm:$0xff]  }
  0x5d   :  { %1343 = vmatpush1.bf16.msra.mxu1 %v2752_v18  ;;  %v2778_v39 = vld [vmem:[#allocation5 + $0x124] ss:$16 sps:$4 sm:$0xff]   ;;  %v2782_v41 = vld [vmem:[#allocation5 + $0x120] ss:$16 sps:$4 sm:$0xff]  }
  0x5e   :  { %1384 = vmatpush1.bf16.msra.mxu0 %v2753_v19  ;;  %1344 = vmatprep.subr.bf16.mxu1 %v2754_v20  ;;  %v2780_v40 = vld [vmem:[#allocation5 + $0x324] ss:$16 sps:$4 sm:$0xff]   ;;  %v2783_v44 = vld [vmem:[#allocation5 + $0x320] ss:$16 sps:$4 sm:$0xff]   ;;  %v2824_v19 = vld [vmem:[#allocation5 + $0x8] ss:$16 sps:$4 sm:$0xff]  }
  0x5f   :  { %1385 = vmatprep.subr.bf16.mxu0 %v2756_v21  ;;  %v2784_v45 = vld [vmem:[#allocation5 + $0x144] ss:$16 sps:$4 sm:$0xff]   ;;  %v2788_v47 = vld [vmem:[#allocation5 + $0x140] ss:$16 sps:$4 sm:$0xff]   ;;  %v2832_v21 = vld [vmem:[#allocation5 + $0x2c] ss:$16 sps:$4 sm:$0xff]  }
  0x60   :  { %v2786_v46 = vld [vmem:[#allocation5 + $0x344] ss:$16 sps:$4 sm:$0xff]   ;;  %v2789_v48 = vld [vmem:[#allocation5 + $0x340] ss:$16 sps:$4 sm:$0xff]  }
  0x61   :  { %1345 = vmatpush1.bf16.msra.mxu1 %v2758_v22  ;;  %v2790_v50 = vld [vmem:[#allocation5 + $0x164] ss:$16 sps:$4 sm:$0xff]   ;;  %v2794_v53 = vld [vmem:[#allocation5 + $0x160] ss:$16 sps:$4 sm:$0xff]  }
  0x62   :  { %1386 = vmatpush1.bf16.msra.mxu0 %v2759_v23  ;;  %1346 = vmatprep.subr.bf16.mxu1 %v2760_v24  ;;  %v2792_v51 = vld [vmem:[#allocation5 + $0x364] ss:$16 sps:$4 sm:$0xff]   ;;  %v2795_v56 = vld [vmem:[#allocation5 + $0x360] ss:$16 sps:$4 sm:$0xff]   ;;  %v2830_v23 = vld [vmem:[#allocation5 + $0x28] ss:$16 sps:$4 sm:$0xff]  }
  0x63   :  { %1387 = vmatprep.subr.bf16.mxu0 %v2762_v25  ;;  %v81_v52 = vld [vmem:[#allocation2] sm:$0xff]  ;;  %v2838_v25 = vld [vmem:[#allocation5 + $0x4c] ss:$16 sps:$4 sm:$0xff]  }
  0x64   :  { %v92_v54 = vrot.slane %v81_v52, %v3361_v49  ;;  %v85_v55 = vcombine.high %v81_v52, %v81_v52  ;;  %v2796_v57 = vld [vmem:[#allocation5 + $0x184] ss:$16 sps:$4 sm:$0xff]   ;;  %v2800_v61 = vld [vmem:[#allocation5 + $0x180] ss:$16 sps:$4 sm:$0xff]  }
  0x65   :  { %1347 = vmatpush1.bf16.msra.mxu1 %v2764_v26  ;;  %v2798_v58 = vld [vmem:[#allocation5 + $0x384] ss:$16 sps:$4 sm:$0xff]   ;;  %v2801_v0 = vld [vmem:[#allocation5 + $0x380] ss:$16 sps:$4 sm:$0xff]  }
  0x66   :  { %1388 = vmatpush1.bf16.msra.mxu0 %v2765_v27  ;;  %1348 = vmatprep.subr.bf16.mxu1 %v2766_v28  ;;  %v100_v59 = vcombine.high %v92_v54, %v92_v54  ;;  %v99_v60 = vrot.slane %v85_v55, %v3361_v49  ;;  %v2802_v1 = vld [vmem:[#allocation5 + $0x1a4] ss:$16 sps:$4 sm:$0xff]   ;;  %v2806_v4 = vld [vmem:[#allocation5 + $0x1a0] ss:$16 sps:$4 sm:$0xff]   ;;  %v3368_v16 = vpack.c.bf16 %v92_v54, %v92_v54  ;;  %v2836_v27 = vld [vmem:[#allocation5 + $0x48] ss:$16 sps:$4 sm:$0xff]  }
  0x67   :  { %1389 = vmatprep.subr.bf16.mxu0 %v2768_v29  ;;  %v2804_v2 = vld [vmem:[#allocation5 + $0x3a4] ss:$16 sps:$4 sm:$0xff]   ;;  %v2807_v5 = vld [vmem:[#allocation5 + $0x3a0] ss:$16 sps:$4 sm:$0xff]   ;;  %v2844_v29 = vld [vmem:[#allocation5 + $0x6c] ss:$16 sps:$4 sm:$0xff]  }
  0x68   :  { %v126_v62 = vpack.c.bf16 %v100_v59, %v100_v59  ;;  %v101_v63 = vcombine.high %v99_v60, %v99_v60  ;;  %v2808_v6 = vld [vmem:[#allocation5 + $0x1c4] ss:$16 sps:$4 sm:$0xff]   ;;  %v2812_v8 = vld [vmem:[#allocation5 + $0x1c0] ss:$16 sps:$4 sm:$0xff]   ;;  %v3370_v18 = vpack.c.bf16 %v99_v60, %v99_v60  ;;  %v2866_v54 = vld [vmem:[#allocation5 + $0xe8] ss:$16 sps:$4 sm:$0xff]  }
  0x69   :  { %1349 = vmatpush1.bf16.msra.mxu1 %v2770_v30  ;;  %v2810_v7 = vld [vmem:[#allocation5 + $0x3c4] ss:$16 sps:$4 sm:$0xff]   ;;  %v2813_v9 = vld [vmem:[#allocation5 + $0x3c0] ss:$16 sps:$4 sm:$0xff]   ;;  %v2880_v60 = vld [vmem:[#allocation5 + $0x12c] ss:$16 sps:$4 sm:$0xff]  }
  0x6a   :  { %1390 = vmatpush1.bf16.msra.mxu0 %v2771_v31  ;;  %1350 = vmatprep.subr.bf16.mxu1 %v2772_v32  ;;  %v3365_v3 = vpack.c.bf16 %v101_v63, %v101_v63  ;;  %v2814_v10 = vld [vmem:[#allocation5 + $0x1e4] ss:$16 sps:$4 sm:$0xff]   ;;  %v2818_v12 = vld [vmem:[#allocation5 + $0x1e0] ss:$16 sps:$4 sm:$0xff]   ;;  %v2842_v31 = vld [vmem:[#allocation5 + $0x68] ss:$16 sps:$4 sm:$0xff]  }
  0x6b   :  { %1391 = vmatprep.subr.bf16.mxu0 %v2774_v33  ;;  %1366 = vmatprep.mubr.bf16.mxu1 %v126_v62  ;;  %v2816_v11 = vld [vmem:[#allocation5 + $0x3e4] ss:$16 sps:$4 sm:$0xff]   ;;  %v2819_v13 = vld [vmem:[#allocation5 + $0x3e0] ss:$16 sps:$4 sm:$0xff]   ;;  %v2850_v33 = vld [vmem:[#allocation5 + $0x8c] ss:$16 sps:$4 sm:$0xff]  }
  0x6c   :  { %1407 = vmatprep.mubr.bf16.mxu0 %v3365_v3  ;;  %v2823_v14 = vld [vmem:[#allocation5 + $0x404] ss:$16 sps:$4 sm:$0xff]   ;;  %v2821_v17 = vld [vmem:[#allocation5 + $0x400] ss:$16 sps:$4 sm:$0xff]  }
  0x6d   :  { %1351 = vmatpush1.bf16.msra.mxu1 %v2776_v34  ;;  %v2829_v20 = vld [vmem:[#allocation5 + $0x424] ss:$16 sps:$4 sm:$0xff]   ;;  %v2827_v22 = vld [vmem:[#allocation5 + $0x420] ss:$16 sps:$4 sm:$0xff]  }
  0x6e   :  { %1392 = vmatpush1.bf16.msra.mxu0 %v2777_v35  ;;  %1352 = vmatprep.subr.bf16.mxu1 %v2778_v39  ;;  %v2835_v24 = vld [vmem:[#allocation5 + $0x444] ss:$16 sps:$4 sm:$0xff]   ;;  %v2833_v26 = vld [vmem:[#allocation5 + $0x440] ss:$16 sps:$4 sm:$0xff]   ;;  %v2848_v35 = vld [vmem:[#allocation5 + $0x88] ss:$16 sps:$4 sm:$0xff]  }
  0x6f   :  { %1393 = vmatprep.subr.bf16.mxu0 %v2780_v40  ;;  %v2841_v28 = vld [vmem:[#allocation5 + $0x464] ss:$16 sps:$4 sm:$0xff]   ;;  %v2839_v30 = vld [vmem:[#allocation5 + $0x460] ss:$16 sps:$4 sm:$0xff]   ;;  %v2854_v40 = vld [vmem:[#allocation5 + $0xa8] ss:$16 sps:$4 sm:$0xff]  }
  0x70   :  { %v2847_v32 = vld [vmem:[#allocation5 + $0x484] ss:$16 sps:$4 sm:$0xff]   ;;  %v2845_v34 = vld [vmem:[#allocation5 + $0x480] ss:$16 sps:$4 sm:$0xff]  }
  0x71   :  { %1353 = vmatpush1.bf16.msra.mxu1 %v2782_v41  ;;  %v2853_v36 = vld [vmem:[#allocation5 + $0x4a4] ss:$16 sps:$4 sm:$0xff]   ;;  %v2851_v39 = vld [vmem:[#allocation5 + $0x4a0] ss:$16 sps:$4 sm:$0xff]  }
  0x72   :  { %1394 = vmatpush1.bf16.msra.mxu0 %v2783_v44  ;;  %1354 = vmatprep.subr.bf16.mxu1 %v2784_v45  ;;  %v2859_v41 = vld [vmem:[#allocation5 + $0x4c4] ss:$16 sps:$4 sm:$0xff]   ;;  %v3374_v44 = vld [vmem:[#allocation2 + $0x8] sm:$0x3f] }
  0x73   :  { %1395 = vmatprep.subr.bf16.mxu0 %v2786_v46  ;;  %v3378_v45 = vrot.slane %v3374_v44, %v3361_v49  ;;  %v2857_v46 = vld [vmem:[#allocation5 + $0x4c0] ss:$16 sps:$4 sm:$0xff]   ;;  %v2871_v55 = vld [vmem:[#allocation5 + $0x504] ss:$16 sps:$4 sm:$0xff]  }
  0x74   :  { %v2877_v59 = vld [vmem:[#allocation5 + $0x524] ss:$16 sps:$4 sm:$0xff]  }
  0x75   :  { %1355 = vmatpush1.bf16.msra.mxu1 %v2788_v47  ;;  %v2860_v47 = vld [vmem:[#allocation5 + $0xc8] ss:$16 sps:$4 sm:$0xff]   ;;  %v2883_v63 = vld [vmem:[#allocation5 + $0x544] ss:$16 sps:$4 sm:$0xff]  }
  0x76   :  { %1396 = vmatpush1.bf16.msra.mxu0 %v2789_v48  ;;  %1356 = vmatprep.subr.bf16.mxu1 %v2790_v50  ;;  %v117_v48 = vcombine.high %v3378_v45, %v3378_v45  ;;  %v2865_v50 = vld [vmem:[#allocation5 + $0x4e4] ss:$16 sps:$4 sm:$0xff]  }
  0x77   :  { %1397 = vmatprep.subr.bf16.mxu0 %v2792_v51  ;;  %v2868_v51 = vld [vmem:[#allocation5 + $0xec] ss:$16 sps:$4 sm:$0xff]  }
  0x78   :  { %v3382_v52 = vpack.c.bf16 %v117_v48, %v117_v48  ;;  %v2944_v48 = vld [vmem:[#allocation5 + $0x2ec] ss:$16 sps:$4 sm:$0xff]  }
  0x79   :  { %1357 = vmatpush1.bf16.msra.mxu1 %v2794_v53  ;;  %v2863_v53 = vld [vmem:[#allocation5 + $0x4e0] ss:$16 sps:$4 sm:$0xff]  }
  0x7a   :  { %1398 = vmatpush1.bf16.msra.mxu0 %v2795_v56  ;;  %1358 = vmatprep.subr.bf16.mxu1 %v2796_v57  ;;  %v2874_v56 = vld [vmem:[#allocation5 + $0x10c] ss:$16 sps:$4 sm:$0xff]   ;;  %v2869_v57 = vld [vmem:[#allocation5 + $0x500] ss:$16 sps:$4 sm:$0xff]  }
  0x7b   :  { %1399 = vmatprep.subr.bf16.mxu0 %v2798_v58  ;;  %v2872_v58 = vld [vmem:[#allocation5 + $0x108] ss:$16 sps:$4 sm:$0xff]  }
  0x7d   :  { %1359 = vmatpush1.bf16.msra.mxu1 %v2800_v61  ;;  %v2875_v61 = vld [vmem:[#allocation5 + $0x520] ss:$16 sps:$4 sm:$0xff]  }
  0x7e   :  { %1400 = vmatpush1.bf16.msra.mxu0 %v2801_v0  ;;  %1360 = vmatprep.subr.bf16.mxu1 %v2802_v1  ;;  %v2886_v0 = vld [vmem:[#allocation5 + $0x14c] ss:$16 sps:$4 sm:$0xff]   ;;  %v2881_v1 = vld [vmem:[#allocation5 + $0x540] ss:$16 sps:$4 sm:$0xff]  }
  0x7f   :  { %1401 = vmatprep.subr.bf16.mxu0 %v2804_v2  ;;  %v2884_v2 = vld [vmem:[#allocation5 + $0x148] ss:$16 sps:$4 sm:$0xff]  }
  0x81   :  { %1361 = vmatpush1.bf16.msra.mxu1 %v2806_v4  ;;  %v2889_v4 = vld [vmem:[#allocation5 + $0x564] ss:$16 sps:$4 sm:$0xff]  }
  0x82   :  { %1402 = vmatpush1.bf16.msra.mxu0 %v2807_v5  ;;  %1362 = vmatprep.subr.bf16.mxu1 %v2808_v6  ;;  %v2892_v5 = vld [vmem:[#allocation5 + $0x16c] ss:$16 sps:$4 sm:$0xff]   ;;  %v2887_v6 = vld [vmem:[#allocation5 + $0x560] ss:$16 sps:$4 sm:$0xff]  }
  0x83   :  { %1403 = vmatprep.subr.bf16.mxu0 %v2810_v7  ;;  %v2890_v7 = vld [vmem:[#allocation5 + $0x168] ss:$16 sps:$4 sm:$0xff]  }
  0x85   :  { %1363 = vmatpush1.bf16.msra.mxu1 %v2812_v8  ;;  %v2895_v8 = vld [vmem:[#allocation5 + $0x584] ss:$16 sps:$4 sm:$0xff]  }
  0x86   :  { %1404 = vmatpush1.bf16.msra.mxu0 %v2813_v9  ;;  %1364 = vmatprep.subr.bf16.mxu1 %v2814_v10  ;;  %v2898_v9 = vld [vmem:[#allocation5 + $0x18c] ss:$16 sps:$4 sm:$0xff]   ;;  %v2893_v10 = vld [vmem:[#allocation5 + $0x580] ss:$16 sps:$4 sm:$0xff]  }
  0x87   :  { %1405 = vmatprep.subr.bf16.mxu0 %v2816_v11  ;;  %v2896_v11 = vld [vmem:[#allocation5 + $0x188] ss:$16 sps:$4 sm:$0xff]  }
  0x89   :  { %1365 = vmatpush1.bf16.msra.mxu1 %v2818_v12  ;;  %v2901_v12 = vld [vmem:[#allocation5 + $0x5a4] ss:$16 sps:$4 sm:$0xff]  }
  0x8a   :  { %1406 = vmatpush1.bf16.msra.mxu0 %v2819_v13  ;;  %1498 = vmatprep.subr.bf16.mxu1 %v2826_v15  ;;  %v2904_v13 = vld [vmem:[#allocation5 + $0x1ac] ss:$16 sps:$4 sm:$0xff]   ;;  %v2902_v15 = vld [vmem:[#allocation5 + $0x1a8] ss:$16 sps:$4 sm:$0xff]  }
  0x8b   :  { %1416 = vmatprep.subr.bf16.mxu0 %v2823_v14  ;;  %v2899_v14 = vld [vmem:[#allocation5 + $0x5a0] ss:$16 sps:$4 sm:$0xff]  }
  0x8c   :  { %1367 = vmatmul.mubr.bf16.vlgmr.msra.gmra.mrb[0].mxu1 %v3368_v16 }
  0x8d   :  { %1408 = vmatmul.mubr.bf16.vlgmr.msra.gmra.mrb[0].mxu0 %v3370_v18  ;;  %1499 = vmatpush1.bf16.msra.mxu1 %v2824_v19  ;;  %v2910_v19 = vld [vmem:[#allocation5 + $0x1cc] ss:$16 sps:$4 sm:$0xff]  }
  0x8e   :  { %1417 = vmatpush1.bf16.msra.mxu0 %v2821_v17  ;;  %1500 = vmatprep.subr.bf16.mxu1 %v2832_v21  ;;  %v2907_v17 = vld [vmem:[#allocation5 + $0x5c4] ss:$16 sps:$4 sm:$0xff]   ;;  %v2908_v21 = vld [vmem:[#allocation5 + $0x1c8] ss:$16 sps:$4 sm:$0xff]  }
  0x8f   :  { %1418 = vmatprep.subr.bf16.mxu0 %v2829_v20  ;;  %1530 = vmatprep.mubr.bf16.mxu1 %v126_v62  ;;  %v2878_v62 = vld [vmem:[#allocation5 + $0x128] ss:$16 sps:$4 sm:$0xff]   ;;  %v2905_v20 = vld [vmem:[#allocation5 + $0x5c0] ss:$16 sps:$4 sm:$0xff]  }
  0x90   :  { %1448 = vmatprep.mubr.bf16.mxu0 %v3382_v52 }
  0x91   :  { %1501 = vmatpush1.bf16.msra.mxu1 %v2830_v23  ;;  %v2916_v23 = vld [vmem:[#allocation5 + $0x1ec] ss:$16 sps:$4 sm:$0xff]  }
  0x92   :  { %1419 = vmatpush1.bf16.msra.mxu0 %v2827_v22  ;;  %1502 = vmatprep.subr.bf16.mxu1 %v2838_v25  ;;  %v2913_v22 = vld [vmem:[#allocation5 + $0x5e4] ss:$16 sps:$4 sm:$0xff]   ;;  %v2914_v25 = vld [vmem:[#allocation5 + $0x1e8] ss:$16 sps:$4 sm:$0xff]  }
  0x93   :  { %1420 = vmatprep.subr.bf16.mxu0 %v2835_v24  ;;  %v2911_v24 = vld [vmem:[#allocation5 + $0x5e0] ss:$16 sps:$4 sm:$0xff]  }
  0x95   :  { %1503 = vmatpush1.bf16.msra.mxu1 %v2836_v27  ;;  %v2926_v27 = vld [vmem:[#allocation5 + $0x604] ss:$16 sps:$4 sm:$0xff]  }
  0x96   :  { %1421 = vmatpush1.bf16.msra.mxu0 %v2833_v26  ;;  %1504 = vmatprep.subr.bf16.mxu1 %v2844_v29  ;;  %v2920_v26 = vld [vmem:[#allocation5 + $0x20c] ss:$16 sps:$4 sm:$0xff]   ;;  %v2918_v29 = vld [vmem:[#allocation5 + $0x208] ss:$16 sps:$4 sm:$0xff]  }
  0x97   :  { %1422 = vmatprep.subr.bf16.mxu0 %v2841_v28  ;;  %v3387_v28 = vpack.c.bf16 %v3378_v45, %v3378_v45  ;;  %v2933_v45 = vld [vmem:[#allocation5 + $0x288] ss:$16 sps:$4 sm:$0xff]  }
  0x99   :  { %1505 = vmatpush1.bf16.msra.mxu1 %v2842_v31  ;;  %v2923_v31 = vld [vmem:[#allocation5 + $0x22c] ss:$16 sps:$4 sm:$0xff]  }
  0x9a   :  { %1423 = vmatpush1.bf16.msra.mxu0 %v2839_v30  ;;  %1506 = vmatprep.subr.bf16.mxu1 %v2850_v33  ;;  %v2924_v30 = vld [vmem:[#allocation5 + $0x600] ss:$16 sps:$4 sm:$0xff]   ;;  %v102_v33 = vcombine.high %v3374_v44, %v3374_v44 }
  0x9b   :  { %1424 = vmatprep.subr.bf16.mxu0 %v2847_v32  ;;  %v3016_v32 = vld [vmem:[#allocation5 + $0x60c] ss:$16 sps:$4 sm:$0xff]  }
  0x9d   :  { %1507 = vmatpush1.bf16.msra.mxu1 %v2848_v35  ;;  %v2929_v35 = vld [vmem:[#allocation5 + $0x24c] ss:$16 sps:$4 sm:$0xff]  }
  0x9e   :  { %1425 = vmatpush1.bf16.msra.mxu0 %v2845_v34  ;;  %1508 = vmatprep.subr.bf16.mxu1 %v2856_v37  ;;  %v2921_v34 = vld [vmem:[#allocation5 + $0x228] ss:$16 sps:$4 sm:$0xff]  }
  0x9f   :  { %1426 = vmatprep.subr.bf16.mxu0 %v2853_v36  ;;  %v3267_v36 = vmov 0   ;;  %v2927_v37 = vld [vmem:[#allocation5 + $0x248] ss:$16 sps:$4 sm:$0xff]  }
  0xa1   :  { %1509 = vmatpush1.bf16.msra.mxu1 %v2854_v40  ;;  %v2932_v40 = vld [vmem:[#allocation5 + $0x26c] ss:$16 sps:$4 sm:$0xff]  }
  0xa2   :  { %1427 = vmatpush1.bf16.msra.mxu0 %v2851_v39  ;;  %1510 = vmatprep.subr.bf16.mxu1 %v2862_v42  ;;  %v116_v39 = vrot.slane %v102_v33, %v3361_v49  ;;  %v3014_v42 = vld [vmem:[#allocation5 + $0x608] ss:$16 sps:$4 sm:$0xff]   ;;  %v3055_v33 = vld [vmem:[#allocation7 + $0xb4] ss:$8 sps:$4 sm:$0xff]  }
  0xa3   :  { %1428 = vmatprep.subr.bf16.mxu0 %v2859_v41  ;;  %v2930_v41 = vld [vmem:[#allocation5 + $0x268] ss:$16 sps:$4 sm:$0xff]  }
  0xa4   :  { %v131_v44 = vpack.c.bf16 %v116_v39, %v116_v39  ;;  %v2939_v49 = vld [vmem:[#allocation5 + $0x2c8] ss:$16 sps:$4 sm:$0xff]  }
  0xa5   :  { %1511 = vmatpush1.bf16.msra.mxu1 %v2860_v47  ;;  %v2941_v47 = vld [vmem:[#allocation5 + $0x2cc] ss:$16 sps:$4 sm:$0xff]   ;;  %v2975_v39 = vld [vmem:[#allocation5 + $0x448] ss:$16 sps:$4 sm:$0xff]  }
  0xa6   :  { %1429 = vmatpush1.bf16.msra.mxu0 %v2857_v46  ;;  %1512 = vmatprep.subr.bf16.mxu1 %v2868_v51  ;;  %v2938_v46 = vld [vmem:[#allocation5 + $0x2ac] ss:$16 sps:$4 sm:$0xff]  }
  0xa7   :  { %1430 = vmatprep.subr.bf16.mxu0 %v2865_v50  ;;  %v3020_v50 = vld [vmem:[#allocation7] ss:$8 sps:$4 sm:$0xff]   ;;  %v3022_v51 = vld [vmem:[#allocation7 + $0x4] ss:$8 sps:$4 sm:$0xff]  }
  0xa9   :  { %1513 = vmatpush1.bf16.msra.mxu1 %v2866_v54  ;;  %v2942_v54 = vld [vmem:[#allocation5 + $0x2e8] ss:$16 sps:$4 sm:$0xff]  }
  0xaa   :  { %1431 = vmatpush1.bf16.msra.mxu0 %v2863_v53  ;;  %1514 = vmatprep.subr.bf16.mxu1 %v2874_v56  ;;  %v3025_v53 = vld [vmem:[#allocation7 + $0x14] ss:$8 sps:$4 sm:$0xff]  }
  0xab   :  { %1432 = vmatprep.subr.bf16.mxu0 %v2871_v55  ;;  %v3023_v55 = vld [vmem:[#allocation7 + $0x10] ss:$8 sps:$4 sm:$0xff]   ;;  %v2947_v56 = vld [vmem:[#allocation5 + $0x30c] ss:$16 sps:$4 sm:$0xff]  }
  0xad   :  { %1515 = vmatpush1.bf16.msra.mxu1 %v2872_v58  ;;  %v2945_v58 = vld [vmem:[#allocation5 + $0x308] ss:$16 sps:$4 sm:$0xff]  }
  0xae   :  { %1433 = vmatpush1.bf16.msra.mxu0 %v2869_v57  ;;  %1516 = vmatprep.subr.bf16.mxu1 %v2880_v60  ;;  %v3028_v57 = vld [vmem:[#allocation7 + $0x24] ss:$8 sps:$4 sm:$0xff]  }
  0xaf   :  { %1434 = vmatprep.subr.bf16.mxu0 %v2877_v59  ;;  %v3026_v59 = vld [vmem:[#allocation7 + $0x20] ss:$8 sps:$4 sm:$0xff]   ;;  %v2950_v60 = vld [vmem:[#allocation5 + $0x32c] ss:$16 sps:$4 sm:$0xff]  }
  0xb1   :  { %1517 = vmatpush1.bf16.msra.mxu1 %v2878_v62  ;;  %v2948_v62 = vld [vmem:[#allocation5 + $0x328] ss:$16 sps:$4 sm:$0xff]  }
  0xb2   :  { %1435 = vmatpush1.bf16.msra.mxu0 %v2875_v61  ;;  %1518 = vmatprep.subr.bf16.mxu1 %v2886_v0  ;;  %v3031_v61 = vld [vmem:[#allocation7 + $0x34] ss:$8 sps:$4 sm:$0xff]  }
  0xb3   :  { %1436 = vmatprep.subr.bf16.mxu0 %v2883_v63  ;;  %v3029_v63 = vld [vmem:[#allocation7 + $0x30] ss:$8 sps:$4 sm:$0xff]   ;;  %v2953_v0 = vld [vmem:[#allocation5 + $0x34c] ss:$16 sps:$4 sm:$0xff]  }
  0xb5   :  { %1519 = vmatpush1.bf16.msra.mxu1 %v2884_v2  ;;  %v2951_v2 = vld [vmem:[#allocation5 + $0x348] ss:$16 sps:$4 sm:$0xff]  }
  0xb6   :  { %1437 = vmatpush1.bf16.msra.mxu0 %v2881_v1  ;;  %1520 = vmatprep.subr.bf16.mxu1 %v2892_v5  ;;  %v3034_v1 = vld [vmem:[#allocation7 + $0x44] ss:$8 sps:$4 sm:$0xff]  }
  0xb7   :  { %1438 = vmatprep.subr.bf16.mxu0 %v2889_v4  ;;  %v3032_v4 = vld [vmem:[#allocation7 + $0x40] ss:$8 sps:$4 sm:$0xff]   ;;  %v2956_v5 = vld [vmem:[#allocation5 + $0x36c] ss:$16 sps:$4 sm:$0xff]  }
  0xb9   :  { %1521 = vmatpush1.bf16.msra.mxu1 %v2890_v7  ;;  %v2954_v7 = vld [vmem:[#allocation5 + $0x368] ss:$16 sps:$4 sm:$0xff]  }
  0xba   :  { %1439 = vmatpush1.bf16.msra.mxu0 %v2887_v6  ;;  %1522 = vmatprep.subr.bf16.mxu1 %v2898_v9  ;;  %v3037_v6 = vld [vmem:[#allocation7 + $0x54] ss:$8 sps:$4 sm:$0xff]  }
  0xbb   :  { %1440 = vmatprep.subr.bf16.mxu0 %v2895_v8  ;;  %v3035_v8 = vld [vmem:[#allocation7 + $0x50] ss:$8 sps:$4 sm:$0xff]   ;;  %v2959_v9 = vld [vmem:[#allocation5 + $0x38c] ss:$16 sps:$4 sm:$0xff]  }
  0xbd   :  { %1523 = vmatpush1.bf16.msra.mxu1 %v2896_v11  ;;  %v2957_v11 = vld [vmem:[#allocation5 + $0x388] ss:$16 sps:$4 sm:$0xff]  }
  0xbe   :  { %1441 = vmatpush1.bf16.msra.mxu0 %v2893_v10  ;;  %1524 = vmatprep.subr.bf16.mxu1 %v2904_v13  ;;  %v3040_v10 = vld [vmem:[#allocation7 + $0x64] ss:$8 sps:$4 sm:$0xff]  }
  0xbf   :  { %1442 = vmatprep.subr.bf16.mxu0 %v2901_v12  ;;  %v3038_v12 = vld [vmem:[#allocation7 + $0x60] ss:$8 sps:$4 sm:$0xff]   ;;  %v2962_v13 = vld [vmem:[#allocation5 + $0x3ac] ss:$16 sps:$4 sm:$0xff]  }
  0xc1   :  { %1525 = vmatpush1.bf16.msra.mxu1 %v2902_v15  ;;  %v2960_v15 = vld [vmem:[#allocation5 + $0x3a8] ss:$16 sps:$4 sm:$0xff]  }
  0xc2   :  { %1443 = vmatpush1.bf16.msra.mxu0 %v2899_v14  ;;  %1526 = vmatprep.subr.bf16.mxu1 %v2910_v19  ;;  %v3043_v14 = vld [vmem:[#allocation7 + $0x74] ss:$8 sps:$4 sm:$0xff]  }
  0xc3   :  { %1444 = vmatprep.subr.bf16.mxu0 %v2907_v17  ;;  %v3041_v17 = vld [vmem:[#allocation7 + $0x70] ss:$8 sps:$4 sm:$0xff]   ;;  %v2965_v19 = vld [vmem:[#allocation5 + $0x3cc] ss:$16 sps:$4 sm:$0xff]  }
  0xc5   :  { %1527 = vmatpush1.bf16.msra.mxu1 %v2908_v21  ;;  %v2963_v21 = vld [vmem:[#allocation5 + $0x3c8] ss:$16 sps:$4 sm:$0xff]  }
  0xc6   :  { %1445 = vmatpush1.bf16.msra.mxu0 %v2905_v20  ;;  %1528 = vmatprep.subr.bf16.mxu1 %v2916_v23  ;;  %v3046_v20 = vld [vmem:[#allocation7 + $0x84] ss:$8 sps:$4 sm:$0xff]  }
  0xc7   :  { %1446 = vmatprep.subr.bf16.mxu0 %v2913_v22  ;;  %v3044_v22 = vld [vmem:[#allocation7 + $0x80] ss:$8 sps:$4 sm:$0xff]   ;;  %v2968_v23 = vld [vmem:[#allocation5 + $0x3ec] ss:$16 sps:$4 sm:$0xff]  }
  0xc9   :  { %1529 = vmatpush1.bf16.msra.mxu1 %v2914_v25  ;;  %v2966_v25 = vld [vmem:[#allocation5 + $0x3e8] ss:$16 sps:$4 sm:$0xff]  }
  0xca   :  { %1447 = vmatpush1.bf16.msra.mxu0 %v2911_v24  ;;  %1539 = vmatprep.subr.bf16.mxu1 %v2920_v26  ;;  %v3049_v24 = vld [vmem:[#allocation7 + $0x94] ss:$8 sps:$4 sm:$0xff]   ;;  %v3047_v26 = vld [vmem:[#allocation7 + $0x90] ss:$8 sps:$4 sm:$0xff]  }
  0xcb   :  { %1457 = vmatprep.subr.bf16.mxu0 %v2926_v27  ;;  %v2971_v27 = vld [vmem:[#allocation5 + $0x40c] ss:$16 sps:$4 sm:$0xff]  }
  0xcc   :  { %1531 = vmatmul.mubr.bf16.vlgmr.msra.gmra.mrb[4].mxu1 %v3368_v16  ;;  %v2935_v16 = vld [vmem:[#allocation5 + $0x28c] ss:$16 sps:$4 sm:$0xff]  }
  0xcd   :  { %1449 = vmatmul.mubr.bf16.vlgmr.msra.gmra.mrb[0].mxu0 %v3387_v28  ;;  %1540 = vmatpush1.bf16.msra.mxu1 %v2918_v29  ;;  %v3052_v29 = vld [vmem:[#allocation7 + $0xa4] ss:$8 sps:$4 sm:$0xff]  }
  0xce   :  { %1458 = vmatpush1.bf16.msra.mxu0 %v2924_v30  ;;  %1541 = vmatprep.subr.bf16.mxu1 %v2923_v31  ;;  %v2969_v30 = vld [vmem:[#allocation5 + $0x408] ss:$16 sps:$4 sm:$0xff]   ;;  %v2974_v31 = vld [vmem:[#allocation5 + $0x42c] ss:$16 sps:$4 sm:$0xff]  }
  0xcf   :  { %1489 = vmatprep.mubr.bf16.mxu0 %v3267_v36  ;;  %1571 = vmatprep.mubr.bf16.mxu1 %v3365_v3  ;;  %v2936_v3 = vld [vmem:[#allocation5 + $0x2a8] ss:$16 sps:$4 sm:$0xff]  }
  0xd0   :  { %1621 = vmatprep.subr.bf16.mxu0 %v3016_v32  ;;  %v3050_v32 = vld [vmem:[#allocation7 + $0xa0] ss:$8 sps:$4 sm:$0xff]  }
  0xd1   :  { %1542 = vmatpush1.bf16.msra.mxu1 %v2921_v34  ;;  %v2972_v34 = vld [vmem:[#allocation5 + $0x428] ss:$16 sps:$4 sm:$0xff]  }
  0xd2   :  { %1543 = vmatprep.subr.bf16.mxu1 %v2929_v35  ;;  %v2977_v35 = vld [vmem:[#allocation5 + $0x44c] ss:$16 sps:$4 sm:$0xff]  }
  0xd5   :  { %1544 = vmatpush1.bf16.msra.mxu1 %v2927_v37  ;;  %v3058_v37 = vld [vmem:[#allocation7 + $0xc4] ss:$8 sps:$4 sm:$0xff]  }
  0xd6   :  { %1545 = vmatprep.subr.bf16.mxu1 %v2932_v40  ;;  %v2980_v40 = vld [vmem:[#allocation5 + $0x46c] ss:$16 sps:$4 sm:$0xff]  }
  0xd9   :  { %2576 = vmatmul.mubr.msk.bf16.vlgmr.msra.gmra.mrb[0].mxu0 %vm1330_vm0, %v131_v44  ;;  %1546 = vmatpush1.bf16.msra.mxu1 %v2930_v41  ;;  %v3056_v41 = vld [vmem:[#allocation7 + $0xc0] ss:$8 sps:$4 sm:$0xff]  }
  0xda   :  { %1622 = vmatpush1.bf16.msra.mxu0 %v3014_v42  ;;  %1547 = vmatprep.subr.bf16.mxu1 %v2935_v16  ;;  %v3061_v42 = vld [vmem:[#allocation7 + $0xd4] ss:$8 sps:$4 sm:$0xff]   ;;  %v2981_v16 = vld [vmem:[#allocation5 + $0x488] ss:$16 sps:$4 sm:$0xff]  }
  0xdb   :  { %1653 = vmatprep.mubr.bf16.mxu0 %v3267_v36  ;;  %2070 = vmatprep.subr.bf16.mxu0 %v3022_v51  ;;  %v3053_v36 = vld [vmem:[#allocation7 + $0xb0] ss:$8 sps:$4 sm:$0xff]  }
  0xdc   :  { %v2993_v51 = vld [vmem:[#allocation5 + $0x508] ss:$16 sps:$4 sm:$0xff]  }
  0xdd   :  { %1548 = vmatpush1.bf16.msra.mxu1 %v2933_v45  ;;  %v2986_v45 = vld [vmem:[#allocation5 + $0x4ac] ss:$16 sps:$4 sm:$0xff]  }
  0xde   :  { %1549 = vmatprep.subr.bf16.mxu1 %v2938_v46  ;;  %v2984_v46 = vld [vmem:[#allocation5 + $0x4a8] ss:$16 sps:$4 sm:$0xff]  }
  0xe1   :  { %2577 = vmatmul.mubr.msk.bf16.vlgmr.msra.gmra.mrb[4].mxu0 %vm1330_vm0, %v131_v44  ;;  %1550 = vmatpush1.bf16.msra.mxu1 %v2936_v3  ;;  %v2983_v44 = vld [vmem:[#allocation5 + $0x48c] ss:$16 sps:$4 sm:$0xff]  }
  0xe2   :  { %1551 = vmatprep.subr.bf16.mxu1 %v2941_v47  ;;  %2071 = vmatpush1.bf16.msra.mxu0 %v3020_v50  ;;  %v2989_v3 = vld [vmem:[#allocation5 + $0x4cc] ss:$16 sps:$4 sm:$0xff]   ;;  %v2987_v47 = vld [vmem:[#allocation5 + $0x4c8] ss:$16 sps:$4 sm:$0xff]  }
  0xe3   :  { %2072 = vmatprep.subr.bf16.mxu0 %v3025_v53  ;;  %v2995_v50 = vld [vmem:[#allocation5 + $0x50c] ss:$16 sps:$4 sm:$0xff]  }
  0xe4   :  { %v2998_v53 = vld [vmem:[#allocation5 + $0x52c] ss:$16 sps:$4 sm:$0xff]  }
  0xe5   :  { %1552 = vmatpush1.bf16.msra.mxu1 %v2939_v49  ;;  %v2992_v49 = vld [vmem:[#allocation5 + $0x4ec] ss:$16 sps:$4 sm:$0xff]  }
  0xe6   :  { %1553 = vmatprep.subr.bf16.mxu1 %v2944_v48  ;;  %2073 = vmatpush1.bf16.msra.mxu0 %v3023_v55  ;;  %v2990_v48 = vld [vmem:[#allocation5 + $0x4e8] ss:$16 sps:$4 sm:$0xff]  }
  0xe7   :  { %2074 = vmatprep.subr.bf16.mxu0 %v3028_v57  ;;  %v2996_v55 = vld [vmem:[#allocation5 + $0x528] ss:$16 sps:$4 sm:$0xff]   ;;  %v3001_v57 = vld [vmem:[#allocation5 + $0x54c] ss:$16 sps:$4 sm:$0xff]  }
  0xe9   :  { %1554 = vmatpush1.bf16.msra.mxu1 %v2942_v54  ;;  %v3064_v54 = vld [vmem:[#allocation7 + $0xe4] ss:$8 sps:$4 sm:$0xff]  }
  0xea   :  { %1555 = vmatprep.subr.bf16.mxu1 %v2947_v56  ;;  %2075 = vmatpush1.bf16.msra.mxu0 %v3026_v59  ;;  %v3062_v56 = vld [vmem:[#allocation7 + $0xe0] ss:$8 sps:$4 sm:$0xff]  }
  0xeb   :  { %2076 = vmatprep.subr.bf16.mxu0 %v3031_v61  ;;  %v2999_v59 = vld [vmem:[#allocation5 + $0x548] ss:$16 sps:$4 sm:$0xff]   ;;  %v3004_v61 = vld [vmem:[#allocation5 + $0x56c] ss:$16 sps:$4 sm:$0xff]  }
  0xed   :  { %1556 = vmatpush1.bf16.msra.mxu1 %v2945_v58  ;;  %v3067_v58 = vld [vmem:[#allocation7 + $0xf4] ss:$8 sps:$4 sm:$0xff]  }
  0xee   :  { %1557 = vmatprep.subr.bf16.mxu1 %v2950_v60  ;;  %2077 = vmatpush1.bf16.msra.mxu0 %v3029_v63  ;;  %v3065_v60 = vld [vmem:[#allocation7 + $0xf0] ss:$8 sps:$4 sm:$0xff]   ;;  %v3007_v63 = vld [vmem:[#allocation5 + $0x58c] ss:$16 sps:$4 sm:$0xff]  }
  0xef   :  { %2078 = vmatprep.subr.bf16.mxu0 %v3034_v1  ;;  %v3005_v1 = vld [vmem:[#allocation5 + $0x588] ss:$16 sps:$4 sm:$0xff]  }
  0xf1   :  { %1558 = vmatpush1.bf16.msra.mxu1 %v2948_v62  ;;  %v3002_v62 = vld [vmem:[#allocation5 + $0x568] ss:$16 sps:$4 sm:$0xff]  }
  0xf2   :  { %1559 = vmatprep.subr.bf16.mxu1 %v2953_v0  ;;  %2079 = vmatpush1.bf16.msra.mxu0 %v3032_v4  ;;  %v3070_v0 = vld [vmem:[#allocation7 + $0x104] ss:$8 sps:$4 sm:$0xff]   ;;  %v3008_v4 = vld [vmem:[#allocation5 + $0x5a8] ss:$16 sps:$4 sm:$0xff]  }
  0xf3   :  { %2080 = vmatprep.subr.bf16.mxu0 %v3037_v6  ;;  %v3011_v6 = vld [vmem:[#allocation5 + $0x5c8] ss:$16 sps:$4 sm:$0xff]  }
  0xf5   :  { %1560 = vmatpush1.bf16.msra.mxu1 %v2951_v2  ;;  %v3010_v2 = vld [vmem:[#allocation5 + $0x5ac] ss:$16 sps:$4 sm:$0xff]  }
  0xf6   :  { %1561 = vmatprep.subr.bf16.mxu1 %v2956_v5  ;;  %2081 = vmatpush1.bf16.msra.mxu0 %v3035_v8  ;;  %v3013_v5 = vld [vmem:[#allocation5 + $0x5cc] ss:$16 sps:$4 sm:$0xff]   ;;  %v3017_v8 = vld [vmem:[#allocation5 + $0x5e8] ss:$16 sps:$4 sm:$0xff]  }
  0xf7   :  { %2082 = vmatprep.subr.bf16.mxu0 %v3040_v10 }
  0xf9   :  { %1562 = vmatpush1.bf16.msra.mxu1 %v2954_v7  ;;  %v3019_v7 = vld [vmem:[#allocation5 + $0x5ec] ss:$16 sps:$4 sm:$0xff]  }
  0xfa   :  { %1563 = vmatprep.subr.bf16.mxu1 %v2959_v9  ;;  %2083 = vmatpush1.bf16.msra.mxu0 %v3038_v12 }
  0xfb   :  { %2084 = vmatprep.subr.bf16.mxu0 %v3043_v14  ;;  %v3402_v14 = vld [vmem:[%s3458_s2] sm:$0xf] }
  0xfd   :  { %1564 = vmatpush1.bf16.msra.mxu1 %v2957_v11 }
  0xfe   :  { %1565 = vmatprep.subr.bf16.mxu1 %v2962_v13  ;;  %2085 = vmatpush1.bf16.msra.mxu0 %v3041_v17  ;;  %v332_v13 = vsub.s32 0, %v3358_v43 }
  0xff   :  { %2086 = vmatprep.subr.bf16.mxu0 %v3046_v20 }
 0x100   :  { %v333_v17 = vrot.slane %v3402_v14, %v332_v13 }
 0x101   :  { %1566 = vmatpush1.bf16.msra.mxu1 %v2960_v15  ;;  %v336_v15 = vsub.s32 1, %v3358_v43 }
 0x102   :  { %1567 = vmatprep.subr.bf16.mxu1 %v2965_v19  ;;  %2087 = vmatpush1.bf16.msra.mxu0 %v3044_v22 }
 0x103   :  { %2088 = vmatprep.subr.bf16.mxu0 %v3049_v24  ;;  %v3116_v24 = vld [vmem:[#allocation8 + $0x40] sm:$0xff]  }
 0x105   :  { %1568 = vmatpush1.bf16.msra.mxu1 %v2963_v21 }
 0x106   :  { %1569 = vmatprep.subr.bf16.mxu1 %v2968_v23  ;;  %2089 = vmatpush1.bf16.msra.mxu0 %v3047_v26  ;;  %v3118_v26 = vld [vmem:[#allocation8 + $0x48] sm:$0xff]  }
 0x107   :  { %2090 = vmatprep.subr.bf16.mxu0 %v3052_v29 }
 0x109   :  { %1570 = vmatpush1.bf16.msra.mxu1 %v2966_v25  ;;  %v3117_v25 = vld [vmem:[#allocation8] sm:$0xff]  }
 0x10a   :  { %1580 = vmatprep.subr.bf16.mxu1 %v2971_v27  ;;  %2091 = vmatpush1.bf16.msra.mxu0 %v3050_v32 }
 0x10b   :  { %2092 = vmatprep.subr.bf16.mxu0 %v3055_v33  ;;  %v3119_v33 = vld [vmem:[#allocation8 + $0x8] sm:$0xff]  }
 0x10c   :  { %1572 = vmatmul.mubr.bf16.vlgmr.msra.gmra.mrb[4].mxu1 %v3370_v18  ;;  %v2978_v18 = vld [vmem:[#allocation5 + $0x468] ss:$16 sps:$4 sm:$0xff]  }
 0x10d   :  { %1581 = vmatpush1.bf16.msra.mxu1 %v2969_v30  ;;  %1612 = vmatprep.mubr.bf16.mxu1 %v3382_v52  ;;  %v3059_v52 = vld [vmem:[#allocation7 + $0xd0] ss:$8 sps:$4 sm:$0xff]  }
 0x10e   :  { %1582 = vmatprep.subr.bf16.mxu1 %v2974_v31  ;;  %2093 = vmatpush1.bf16.msra.mxu0 %v3053_v36 }
 0x10f   :  { %2094 = vmatprep.subr.bf16.mxu0 %v3058_v37 }
 0x111   :  { %1583 = vmatpush1.bf16.msra.mxu1 %v2972_v34 }
 0x112   :  { %1584 = vmatprep.subr.bf16.mxu1 %v2977_v35  ;;  %2095 = vmatpush1.bf16.msra.mxu0 %v3056_v41  ;;  %v3120_v35 = vld [vmem:[#allocation8 + $0x50] sm:$0xff]  }
 0x113   :  { %2096 = vmatprep.subr.bf16.mxu0 %v3061_v42  ;;  %v3121_v41 = vld [vmem:[#allocation8 + $0x10] sm:$0xff]  }
 0x115   :  { %1585 = vmatpush1.bf16.msra.mxu1 %v2975_v39  ;;  %v3068_v39 = vld [vmem:[#allocation7 + $0x100] ss:$8 sps:$4 sm:$0xff]  }
 0x116   :  { %1586 = vmatprep.subr.bf16.mxu1 %v2980_v40  ;;  %2097 = vmatpush1.bf16.msra.mxu0 %v3059_v52  ;;  %v3122_v52 = vld [vmem:[#allocation8 + $0x58] sm:$0xff]  }
 0x117   :  { %2098 = vmatprep.subr.bf16.mxu0 %v3064_v54  ;;  %v3077_v54 = vld [vmem:[#allocation7 + $0x130] ss:$8 sps:$4 sm:$0xff]  }
 0x119   :  { %1587 = vmatpush1.bf16.msra.mxu1 %v2978_v18  ;;  %v3073_v18 = vld [vmem:[#allocation7 + $0x114] ss:$8 sps:$4 sm:$0xff]  }
 0x11a   :  { %1588 = vmatprep.subr.bf16.mxu1 %v2983_v44  ;;  %2099 = vmatpush1.bf16.msra.mxu0 %v3062_v56  ;;  %v3080_v56 = vld [vmem:[#allocation7 + $0x140] ss:$8 sps:$4 sm:$0xff]  }
 0x11b   :  { %2100 = vmatprep.subr.bf16.mxu0 %v3067_v58  ;;  %v3083_v58 = vld [vmem:[#allocation7 + $0x150] ss:$8 sps:$4 sm:$0xff]  }
 0x11d   :  { %1589 = vmatpush1.bf16.msra.mxu1 %v2981_v16 }
 0x11e   :  { %1590 = vmatprep.subr.bf16.mxu1 %v2986_v45  ;;  %2101 = vmatpush1.bf16.msra.mxu0 %v3065_v60  ;;  %v3086_v60 = vld [vmem:[#allocation7 + $0x160] ss:$8 sps:$4 sm:$0xff]  }
 0x11f   :  { %2111 = vmatprep.subr.bf16.mxu0 %v3070_v0  ;;  %v3092_v0 = vld [vmem:[#allocation7 + $0x180] ss:$8 sps:$4 sm:$0xff]  }
 0x121   :  { %1591 = vmatpush1.bf16.msra.mxu1 %v2984_v46  ;;  %v3071_v46 = vld [vmem:[#allocation7 + $0x110] ss:$8 sps:$4 sm:$0xff]  }
 0x122   :  { %1592 = vmatprep.subr.bf16.mxu1 %v2989_v3  ;;  %v3123_v3 = vld [vmem:[#allocation8 + $0x18] sm:$0xff]  }
 0x125   :  { %1593 = vmatpush1.bf16.msra.mxu1 %v2987_v47  ;;  %v3076_v47 = vld [vmem:[#allocation7 + $0x124] ss:$8 sps:$4 sm:$0xff]  }
 0x126   :  { %1594 = vmatprep.subr.bf16.mxu1 %v2992_v49  ;;  %v3124_v49 = vld [vmem:[#allocation8 + $0x60] sm:$0xff]  }
 0x129   :  { %1595 = vmatpush1.bf16.msra.mxu1 %v2990_v48  ;;  %v3074_v48 = vld [vmem:[#allocation7 + $0x120] ss:$8 sps:$4 sm:$0xff]  }
 0x12a   :  { %1596 = vmatprep.subr.bf16.mxu1 %v2995_v50  ;;  %v3125_v50 = vld [vmem:[#allocation8 + $0x20] sm:$0xff]  }
 0x12d   :  { %1597 = vmatpush1.bf16.msra.mxu1 %v2993_v51  ;;  %v3079_v51 = vld [vmem:[#allocation7 + $0x134] ss:$8 sps:$4 sm:$0xff]  }
 0x12e   :  { %1598 = vmatprep.subr.bf16.mxu1 %v2998_v53  ;;  %v3126_v53 = vld [vmem:[#allocation8 + $0x68] sm:$0xff]  }
 0x131   :  { %1599 = vmatpush1.bf16.msra.mxu1 %v2996_v55  ;;  %v3082_v55 = vld [vmem:[#allocation7 + $0x144] ss:$8 sps:$4 sm:$0xff]  }
 0x132   :  { %1600 = vmatprep.subr.bf16.mxu1 %v3001_v57  ;;  %v3085_v57 = vld [vmem:[#allocation7 + $0x154] ss:$8 sps:$4 sm:$0xff]  }
 0x135   :  { %1601 = vmatpush1.bf16.msra.mxu1 %v2999_v59  ;;  %v3088_v59 = vld [vmem:[#allocation7 + $0x164] ss:$8 sps:$4 sm:$0xff]  }
 0x136   :  { %1602 = vmatprep.subr.bf16.mxu1 %v3004_v61  ;;  %v3091_v61 = vld [vmem:[#allocation7 + $0x174] ss:$8 sps:$4 sm:$0xff]  }
 0x139   :  { %1603 = vmatpush1.bf16.msra.mxu1 %v3002_v62  ;;  %v3089_v62 = vld [vmem:[#allocation7 + $0x170] ss:$8 sps:$4 sm:$0xff]  }
 0x13a   :  { %1604 = vmatprep.subr.bf16.mxu1 %v3007_v63  ;;  %v3094_v63 = vld [vmem:[#allocation7 + $0x184] ss:$8 sps:$4 sm:$0xff]  }
 0x13d   :  { %1605 = vmatpush1.bf16.msra.mxu1 %v3005_v1  ;;  %v3097_v1 = vld [vmem:[#allocation7 + $0x194] ss:$8 sps:$4 sm:$0xff]  }
 0x13e   :  { %1606 = vmatprep.subr.bf16.mxu1 %v3010_v2  ;;  %v3095_v2 = vld [vmem:[#allocation7 + $0x190] ss:$8 sps:$4 sm:$0xff]  }
 0x141   :  { %1607 = vmatpush1.bf16.msra.mxu1 %v3008_v4  ;;  %v3100_v4 = vld [vmem:[#allocation7 + $0x1a4] ss:$8 sps:$4 sm:$0xff]  }
 0x142   :  { %1608 = vmatprep.subr.bf16.mxu1 %v3013_v5  ;;  %v3098_v5 = vld [vmem:[#allocation7 + $0x1a0] ss:$8 sps:$4 sm:$0xff]  }
 0x145   :  { %1609 = vmatpush1.bf16.msra.mxu1 %v3011_v6  ;;  %v3103_v6 = vld [vmem:[#allocation7 + $0x1b4] ss:$8 sps:$4 sm:$0xff]  }
 0x146   :  { %1610 = vmatprep.subr.bf16.mxu1 %v3019_v7  ;;  %v3101_v7 = vld [vmem:[#allocation7 + $0x1b0] ss:$8 sps:$4 sm:$0xff]  }
 0x149   :  { %1611 = vmatpush1.bf16.msra.mxu1 %v3017_v8  ;;  %v3106_v8 = vld [vmem:[#allocation7 + $0x1c4] ss:$8 sps:$4 sm:$0xff]  }
 0x14a   :  { %2659 = vmatprep.subr.bf16.mxu1 %v3116_v24 }
 0x14c   :  { %1613 = vmatmul.mubr.bf16.vlgmr.msra.gmra.mrb[4].mxu1 %v3387_v28  ;;  %v337_v28 = vrot.slane %v3402_v14, %v336_v15 }
 0x14d   :  { %2660 = vmatpush3.bf16.msra.mxu1 %v3117_v25 }
 0x14e   :  { %2661 = vmatprep.subr.bf16.mxu1 %v3118_v26 }
 0x151   :  { %2662 = vmatpush3.bf16.msra.mxu1 %v3119_v33 }
 0x152   :  { %2663 = vmatprep.subr.bf16.mxu1 %v3120_v35 }
 0x155   :  { %2664 = vmatpush3.bf16.msra.mxu1 %v3121_v41  ;;  %v3127_v41 = vld [vmem:[#allocation8 + $0x28] sm:$0xff]  }
 0x156   :  { %2665 = vmatprep.subr.bf16.mxu1 %v3122_v52  ;;  %v3131_v52 = vld [vmem:[#allocation8 + $0x38] sm:$0xff]  }
 0x159   :  { %2666 = vmatpush3.bf16.msra.mxu1 %v3123_v3 }
 0x15a   :  { %2667 = vmatprep.subr.bf16.mxu1 %v3124_v49 }
 0x15d   :  { %2668 = vmatpush3.bf16.msra.mxu1 %v3125_v50 }
 0x15e   :  { %2669 = vmatprep.subr.bf16.mxu1 %v3126_v53 }
 0x15f   :  { %v1368_v9 = vpop.f32.mrb[0].mxu1 }
 0x160   :  { %v1370_v10 = vpop.f32.mrb[1].mxu1  ;;  %v1369_v19 = vadd.f32 %v1368_v9, %v333_v17  ;;  %v3104_v9 = vld [vmem:[#allocation7 + $0x1c0] ss:$8 sps:$4 sm:$0xff]  }
 0x161   :  { %v1372_v11 = vpop.f32.mrb[2].mxu1  ;;  %v1371_v20 = vadd.f32 %v1370_v10, %v337_v28  ;;  %v3109_v10 = vld [vmem:[#allocation7 + $0x1d4] ss:$8 sps:$4 sm:$0xff]   ;;  %v3110_v17 = vld [vmem:[#allocation7 + $0x1e0] ss:$8 sps:$4 sm:$0xff]   ;;  %2670 = vmatpush3.bf16.msra.mxu1 %v3127_v41 }
 0x162   :  { %v1373_v12 = vpop.f32.mrb[3].mxu1  ;;  %v3107_v11 = vld [vmem:[#allocation7 + $0x1d0] ss:$8 sps:$4 sm:$0xff]   ;;  %v3115_v28 = vld [vmem:[#allocation7 + $0x1f4] ss:$8 sps:$4 sm:$0xff]  }
 0x163   :  { %v3112_v12 = vld [vmem:[#allocation7 + $0x1e4] ss:$8 sps:$4 sm:$0xff]  }
 0x1ac   :  { %v1491_v21 = vpop.f32.mrb[0].mxu0 }
 0x1ad   :  { %v2682_v22 = vadd.f32 %v1491_v21, %v1369_v19  ;;  %v1493_v23 = vpop.f32.mrb[1].mxu0  ;;  %v3113_v19 = vld [vmem:[#allocation7 + $0x1f0] ss:$8 sps:$4 sm:$0xff]   ;;  %v344_v21 = vsub.s32 3, %v3358_v43 }
 0x1ae   :  { %v2684_v27 = vadd.f32 %v1493_v23, %v1371_v20  ;;  %v1495_v29 = vpop.f32.mrb[2].mxu0  ;;  %v340_v20 = vsub.s32 2, %v3358_v43  ;;  %v2642_v43 = vld [vmem:[%s3462_s6] ss:$0 sm:$0xff]  ;;  %s3268_s6 = smov [#allocation10]  }
 0x1af   :  { %v1662_v30 = vmul.f32 0.2, %v2682_v22  ;;  %v1496_v31 = vpop.f32.mrb[3].mxu0  ;;  %v345_v23 = vrot.slane %v3402_v14, %v344_v21  ;;  %s2369_s8 = sshll.u32 %s3268_s6, 4  ;;  %s2370_s8 = int_to_ptr.vmem [resolvable:$true] %s2369_s8 }
 0x1b0   :  { %v1663_v32 = vmul.f32 0.2, %v2684_v27  ;;  %s3226_s9 = scalar_lea.vmem %s2370_s8, 32  ;;  %p3231_p5 = scmp.lt.s32.totalorder %s2370_s8, %s2370_s8 }
 0x1b1   :  { %v1666_v34 = vmax.f32 %v2682_v22, %v1662_v30  ;;  %v341_v22 = vrot.slane %v3402_v14, %v340_v20  ;;  %v3128_v14 = vld [vmem:[#allocation8 + $0x70] sm:$0xff]   ;;  %p3227_p4 = scmp.ne.s32.totalorder %s2370_s8, %s3226_s9  ;;  %p3232_p6 = scmp.lt.s32.totalorder %s3226_s9, %s3226_s9 }
 0x1b2   :  { %v1667_v36 = vmax.f32 %v2684_v27, %v1663_v32  ;;  %2671 = vmatprep.subr.bf16.mxu1 %v3128_v14 }
 0x1b3   :  { %v1670_v42 = vpack.c.bf16 %v1666_v34, %v1666_v34  ;;  %p3233_p7 = por %p3232_p6, %p3231_p5 }
 0x1b4   :  { %v1671_v37 = vpack.c.bf16 %v1667_v36, %v1667_v36  ;;  %v3411_v40 = vpop.f32.mrb[4].mxu0 }
 0x1b5   :  { %v3413_v44 = vpop.f32.mrb[5].mxu0  ;;  %p3234_p8 = pnand %p3233_p7, %p3227_p4 }
 0x1b6   :  { %2102 = vmatprep.mubr.bf16.mxu0 %v1671_v37  ;;  %v1659_v16 = vpop.f32.mrb[6].mxu0 }
 0x1b7   :  { %2103 = vmatmul.mubr.bf16.vlgmr.msra.gmra.mrb[8].mxu0 %v1670_v42  ;;  %v1660_v45 = vpop.f32.mrb[7].mxu0  ;;  %v3129_v42 = vld [vmem:[#allocation8 + $0x30] sm:$0xff]  }
 0x1b8   :  { %2112 = vmatpush1.bf16.msra.mxu0 %v3068_v39  ;;  %2672 = vmatpush3.bf16.msra.mxu1 %v3129_v42 }
 0x1b9   :  { %2113 = vmatprep.subr.bf16.mxu0 %v3073_v18  ;;  %v3130_v18 = vld [vmem:[#allocation8 + $0x78] sm:$0xff]  }
 0x1ba   :  { %2673 = vmatprep.subr.bf16.mxu1 %v3130_v18 }
 0x1bc   :  { %2114 = vmatpush1.bf16.msra.mxu0 %v3071_v46  ;;  %2674 = vmatpush3.bf16.msra.mxu1 %v3131_v52 }
 0x1bd   :  { %2115 = vmatprep.subr.bf16.mxu0 %v3076_v47 }
 0x1c0   :  { %2116 = vmatpush1.bf16.msra.mxu0 %v3074_v48 }
 0x1c1   :  { %2117 = vmatprep.subr.bf16.mxu0 %v3079_v51 }
 0x1c4   :  { %2118 = vmatpush1.bf16.msra.mxu0 %v3077_v54 }
 0x1c5   :  { %2119 = vmatprep.subr.bf16.mxu0 %v3082_v55 }
 0x1c8   :  { %2120 = vmatpush1.bf16.msra.mxu0 %v3080_v56 }
 0x1c9   :  { %2121 = vmatprep.subr.bf16.mxu0 %v3085_v57  ;;  %v2334_v57 = vand.u32 127, %v89_v38 }
 0x1cb   :  { %vm2335_vm1 = vcmp.ge.s32.totalorder %v2334_v57, 1  ;;  %vm2336_vm2 = vcmp.le.s32.totalorder %v2334_v57, 10  ;;  %vm2343_vm5 = vcmp.eq.s32.totalorder %v2334_v57, 0 }
 0x1cc   :  { %2122 = vmatpush1.bf16.msra.mxu0 %v3083_v58  ;;  %vm3432_vm3 = vmand %vm2335_vm1, %vm2336_vm2 }
 0x1cd   :  { %2123 = vmatprep.subr.bf16.mxu0 %v3088_v59 }
 0x1d0   :  { %2124 = vmatpush1.bf16.msra.mxu0 %v3086_v60 }
 0x1d1   :  { %2125 = vmatprep.subr.bf16.mxu0 %v3091_v61 }
 0x1d4   :  { %2126 = vmatpush1.bf16.msra.mxu0 %v3089_v62 }
 0x1d5   :  { %2127 = vmatprep.subr.bf16.mxu0 %v3094_v63 }
 0x1d8   :  { %2128 = vmatpush1.bf16.msra.mxu0 %v3092_v0 }
 0x1d9   :  { %2129 = vmatprep.subr.bf16.mxu0 %v3097_v1 }
 0x1dc   :  { %2130 = vmatpush1.bf16.msra.mxu0 %v3095_v2 }
 0x1dd   :  { %2131 = vmatprep.subr.bf16.mxu0 %v3100_v4 }
 0x1e0   :  { %2132 = vmatpush1.bf16.msra.mxu0 %v3098_v5 }
 0x1e1   :  { %2133 = vmatprep.subr.bf16.mxu0 %v3103_v6 }
 0x1e4   :  { %2134 = vmatpush1.bf16.msra.mxu0 %v3101_v7 }
 0x1e5   :  { %2135 = vmatprep.subr.bf16.mxu0 %v3106_v8 }
 0x1e8   :  { %2136 = vmatpush1.bf16.msra.mxu0 %v3104_v9 }
 0x1e9   :  { %2137 = vmatprep.subr.bf16.mxu0 %v3109_v10 }
 0x1ec   :  { %2138 = vmatpush1.bf16.msra.mxu0 %v3107_v11 }
 0x1ed   :  { %2139 = vmatprep.subr.bf16.mxu0 %v3112_v12 }
 0x1f0   :  { %2140 = vmatpush1.bf16.msra.mxu0 %v3110_v17 }
 0x1f1   :  { %2141 = vmatprep.subr.bf16.mxu0 %v3115_v28 }
 0x1f4   :  { %2142 = vmatpush1.bf16.msra.mxu0 %v3113_v19 }
 0x21f   :  { %v1614_v24 = vpop.f32.mrb[4].mxu1 }
 0x220   :  { %v2685_v25 = vadd.f32 %v1614_v24, %v341_v22  ;;  %v1616_v26 = vpop.f32.mrb[5].mxu1 }
 0x221   :  { %v2687_v27 = vadd.f32 %v1616_v26, %v345_v23  ;;  %v1618_v29 = vpop.f32.mrb[6].mxu1 }
 0x222   :  { %v2686_v30 = vadd.f32 %v2685_v25, %v3411_v40  ;;  %v1619_v31 = vpop.f32.mrb[7].mxu1  ;;  %v1738_v40 = vld [vmem:[%s3460_s4] sm:$0x3] }
 0x223   :  { %v2688_v32 = vadd.f32 %v2687_v27, %v3413_v44  ;;  %v1743_v44 = vrot.slane %v1738_v40, %v332_v13  ;;  %v1747_v16 = vrot.slane %v1738_v40, %v336_v15 }
 0x224   :  { %v1664_v33 = vmul.f32 0.2, %v2686_v30 }
 0x225   :  { %v1665_v34 = vmul.f32 0.2, %v2688_v32 }
 0x226   :  { %v1668_v35 = vmax.f32 %v2686_v30, %v1664_v33 }
 0x227   :  { %v1669_v36 = vmax.f32 %v2688_v32, %v1665_v34 }
 0x228   :  { %v1672_v39 = vpack.c.bf16 %v1668_v35, %v1668_v35 }
 0x229   :  { %v1673_v37 = vpack.c.bf16 %v1669_v36, %v1669_v36 }
 0x22b   :  { %2143 = vmatprep.mubr.bf16.mxu0 %v1673_v37 }
 0x22c   :  { %2144 = vmatmul.mubr.bf16.vlgmr.msra.gmra.mrb[8].mxu0 %v1672_v39 }
 0x2ff   :  { %v2145_v45 = vpop.f32.mrb[8].mxu0 }
 0x300   :  { %v2689_v46 = vadd.f32 %v2145_v45, %v1743_v44  ;;  %v2147_v3 = vpop.f32.mrb[9].mxu0 }
 0x301   :  { %v2690_v47 = vadd.f32 %v2147_v3, %v1747_v16  ;;  %v2149_v49 = vpop.f32.mrb[10].mxu0 }
 0x302   :  { %v2152_v48 = vmul.f32 0.2, %v2689_v46  ;;  %v2150_v50 = vpop.f32.mrb[11].mxu0 }
 0x303   :  { %v2153_v51 = vmul.f32 0.2, %v2690_v47 }
 0x304   :  { %v2154_v53 = vmax.f32 %v2689_v46, %v2152_v48 }
 0x305   :  { %v2155_v54 = vmax.f32 %v2690_v47, %v2153_v51 }
 0x306   :  { %v2156_v56 = vpack.c.bf16 %v2154_v53, %v2154_v53 }
 0x307   :  { %v2157_v55 = vpack.c.bf16 %v2155_v54, %v2155_v54 }
 0x309   :  { %2325 = vmatprep.mubr.bf16.mxu1 %v2157_v55 }
 0x30a   :  { %2326 = vmatmul.mubr.bf16.vlgmr.msra.gmra.mrb[8].mxu1 %v2156_v56 }
 0x3dd   :  { %v2675_v13 = vpop.f32.mrb[8].mxu1 }
 0x3de   :  { %v2676_v15 = vpop.f32.mrb[9].mxu1 }
 0x3df   :  { %v2677_v58 = vadd.f32 %v2676_v15, %v2675_v13  ;;  %v2678_v59 = vpop.f32.mrb[10].mxu1 }
 0x3e0   :  { %v2679_v60 = vpop.f32.mrb[11].mxu1 }
 0x3e1   :  { %v2328_v62 = vadd.f32 %v2677_v58, %v2642_v43 }
 0x3e3   :  { %v2338_v38 = vsel %vm3432_vm3, %v2328_v62, -inf  ;;  %v2344_v1 = vsub.f32 0.0, %v2328_v62 }
 0x3e4   :  { %v2340_v63 = vsel %vm2339_vm4, %v2338_v38, -inf }
 0x3e5   :  { %2341 = vmax.xlane.f32.xlu0 %v2340_v63 }
 0x472   :  { %v2342_v0 = vpop.xlane.xlu0 %2341 }
 0x473   :  { %v2345_v2 = vsub.f32 %v2328_v62, %v2342_v0 }
 0x475   :  { %v2346_v4 = vsel %vm2343_vm5, %v2344_v1, %v2345_v2 }
 0x476   :  { %v2347_v5 = vmul.f32 1.442695, %v2346_v4 }
 0x478   :  { %3132 = vpow2.f32 %v2347_v5 }
 0x482   :  { %v3133_v6 = vpop.eup %3132 }
 0x483   :  { %v2352_v7 = vsel %vm3432_vm3, %v3133_v6, 0.0  ;;  %v2349_v10 = vadd.f32 1.0, %v3133_v6 }
 0x484   :  { %v2353_v8 = vsel %vm2339_vm4, %v2352_v7, 0.0 }
 0x485   :  { %2354 = vadd.xlane.f32.xlu0 %v2353_v8 }
 0x512   :  { %v2355_v9 = vpop.xlane.xlu0 %2354 }
 0x513   :  { %3134 = vlog2.f32 %v2355_v9 }
 0x514   :  { %3136 = vrcp.f32 %v2349_v10 }
 0x51d   :  { %v3135_v11 = vpop.eup %3134 }
 0x51e   :  { %v2357_v12 = vmul.f32 0.6931472, %v3135_v11  ;;  %v3137_v19 = vpop.eup %3136 }
 0x520   :  { %v2358_v17 = vadd.f32 %v2357_v12, %v2342_v0 }
 0x522   :  { %v2359_v28 = vsub.f32 %v2328_v62, %v2358_v17 }
 0x524   :  { %v2360_v20 = vsel %vm3432_vm3, %v2359_v28, 0.0 }
 0x525   :  { %v2361_v21 = vsel %vm2343_vm5, %v3137_v19, %v2360_v20 }
 0x526   :  { %2362 = vst [vmem:[#allocation10] sm:$0x3] %v2361_v21 }
 0x527   :  { %3237 = shalt.err (!%p3234_p8)
}
 0x528   :  { %s3238_s12 = scalar_lea.hbm %s3463_s7, 32 }
 0x529   :  { %p3239_p9 = scmp.ne.s32.totalorder %s3463_s7, %s3238_s12  ;;  %p3242_p10 = scmp.lt.u32.totalorder %s3238_s12, %s3463_s7 }
 0x52b   :  { %p3244_p11 = pnand %p3242_p10, %p3239_p9 }
 0x52d   :  { %3247 = shalt.err (!%p3244_p11)
}
 0x52e   :  { %2372 = dma.vmem_to_hbm [thread:$0]  %s2370_s8, 32, %s3463_s7, [#allocation4]  }
 0x52f   :  { %3254 = dma.done.wait [#allocation4], 32  }
 0x530   :  { %3255 = vsyncadd [#allocation4], 4294967264 }
 0x531   :  { %2376 = vsyncpa [#allocation3], 1 }
 0x532   :  { %2377 = vsyncpa [#allocation6], 1 }
 0x533   :  { %2378 = vsyncpa [#allocation9], 1 }
 0x534   :  { %2379 = vsyncpa [#allocation4], 1 }

</bundles_post_ra>
